<compile_context>
chip_gen: v7x
topology: tpu7x:2x2x1
jax: 0.10.0
libtpu: 0.0.40
codegen_flags: <defaults>
</compile_context>

<pallas_src>
import functools

import jax
import jax.numpy as jnp
from jax.experimental import pallas as pl
from jax.experimental.pallas import tpu as pltpu


# Set to jnp.bfloat16 on v5e/v6e/v7x to double MXU rate; accumulation stays f32
# via preferred_element_type, and softmax / LayerNorm / ReLU math stays f32.
MATMUL_DTYPE = jnp.float32
LN_EPS = 1e-5


def _mm(a, b):
    return jnp.dot(a.astype(MATMUL_DTYPE), b.astype(MATMUL_DTYPE),
                   preferred_element_type=jnp.float32)


def _layer_norm(y, g, bt):
    mu = jnp.mean(y, axis=-1, keepdims=True)
    var = jnp.mean((y - mu) ** 2, axis=-1, keepdims=True)   # biased, like torch LN
    return (y - mu) * jax.lax.rsqrt(var + LN_EPS) * g + bt


def _row_tile(n, max_tile=256):
    # Largest convenient row tile that divides n (full extent for small/odd n).
    for t in (256, 128, 64, 32, 16, 8):
        if t <= max_tile and n % t == 0:
            return t
    return n


_PARALLEL = pltpu.CompilerParams(dimension_semantics=("parallel",))


# ----------------------------- Pallas kernels ------------------------------

def _linear_kernel(x_ref, w_ref, b_ref, o_ref):
    # o = x @ w + b   (w may be a fused [wq|wk|wv] or [wk|wv] concatenation)
    o_ref[...] = _mm(x_ref[...], w_ref[...]) + b_ref[...]


def linear(x, w, b):
    # x: (N, in), w: (in, out), b: (1, out) -> (N, out); tiled over rows,
    # weights/bias resident across the grid.
    n, m_in = x.shape
    m_out = w.shape[1]
    tn = _row_tile(n)
    return pl.pallas_call(
        _linear_kernel,
        grid=(n // tn,),
        in_specs=[
            pl.BlockSpec((tn, m_in), lambda i: (i, 0)),
            pl.BlockSpec((m_in, m_out), lambda i: (0, 0)),
            pl.BlockSpec((1, m_out), lambda i: (0, 0)),
        ],
        out_specs=pl.BlockSpec((tn, m_out), lambda i: (i, 0)),
        out_shape=jax.ShapeDtypeStruct((n, m_out), jnp.float32),
        compiler_params=_PARALLEL,
    )(x, w, b)


def _outproj_ln_q_kernel(ctx_ref, res_ref, wo_ref, bo_ref, g_ref, bt_ref,
                         wq_ref, bq_ref, o_ref, q_ref):
    # dec_output = LayerNorm(residual + ctx @ Wo + bo)
    # q_cross    = dec_output @ Wq + bq         (fused: next block's Q projection)
    y = res_ref[...] + _mm(ctx_ref[...], wo_ref[...]) + bo_ref[...]
    ln = _layer_norm(y, g_ref[...], bt_ref[...])
    o_ref[...] = ln
    q_ref[...] = _mm(ln, wq_ref[...]) + bq_ref[...]


def out_proj_ln_q(ctx, residual, wo, bo, gamma, beta, wq, bq):
    n, m = ctx.shape
    tn = _row_tile(n)
    return pl.pallas_call(
        _outproj_ln_q_kernel,
        grid=(n // tn,),
        in_specs=[
            pl.BlockSpec((tn, m), lambda i: (i, 0)),
            pl.BlockSpec((tn, m), lambda i: (i, 0)),
            pl.BlockSpec((m, m), lambda i: (0, 0)),
            pl.BlockSpec((1, m), lambda i: (0, 0)),
            pl.BlockSpec((1, m), lambda i: (0, 0)),
            pl.BlockSpec((1, m), lambda i: (0, 0)),
            pl.BlockSpec((m, m), lambda i: (0, 0)),
            pl.BlockSpec((1, m), lambda i: (0, 0)),
        ],
        out_specs=[
            pl.BlockSpec((tn, m), lambda i: (i, 0)),
            pl.BlockSpec((tn, m), lambda i: (i, 0)),
        ],
        out_shape=(
            jax.ShapeDtypeStruct((n, m), jnp.float32),
            jax.ShapeDtypeStruct((n, m), jnp.float32),
        ),
        compiler_params=_PARALLEL,
    )(ctx, residual, wo, bo, gamma, beta, wq, bq)


def _outproj_ln_ffn_ln_kernel(ctx_ref, res_ref, wo_ref, bo_ref, g1_ref, bt1_ref,
                              w1_ref, b1_ref, w2_ref, b2_ref, g2_ref, bt2_ref,
                              o_ref):
    # x = LayerNorm1(residual + ctx @ Wo + bo)          (cross-attn output proj)
    # o = LayerNorm2(x + relu(x @ W1 + b1) @ W2 + b2)   (positionwise FFN)
    y = res_ref[...] + _mm(ctx_ref[...], wo_ref[...]) + bo_ref[...]
    x = _layer_norm(y, g1_ref[...], bt1_ref[...])
    h = jnp.maximum(_mm(x, w1_ref[...]) + b1_ref[...], 0.0)     # ReLU in f32
    y2 = x + _mm(h, w2_ref[...]) + b2_ref[...]
    o_ref[...] = _layer_norm(y2, g2_ref[...], bt2_ref[...])


def out_proj_ln_ffn_ln(ctx, residual, wo, bo, g1, bt1, w1, b1, w2, b2, g2, bt2):
    # NOTE: all weights are resident across the row grid.  For very large M/F on
    # v7x (64 MiB VMEM) the hidden dim F would be split into a trailing
    # "arbitrary" reduction axis with a VMEM accumulator; unnecessary here.
    n, m = ctx.shape
    f = w1.shape[1]
    tn = _row_tile(n)
    return pl.pallas_call(
        _outproj_ln_ffn_ln_kernel,
        grid=(n // tn,),
        in_specs=[
            pl.BlockSpec((tn, m), lambda i: (i, 0)),
            pl.BlockSpec((tn, m), lambda i: (i, 0)),
            pl.BlockSpec((m, m), lambda i: (0, 0)),
            pl.BlockSpec((1, m), lambda i: (0, 0)),
            pl.BlockSpec((1, m), lambda i: (0, 0)),
            pl.BlockSpec((1, m), lambda i: (0, 0)),
            pl.BlockSpec((m, f), lambda i: (0, 0)),
            pl.BlockSpec((1, f), lambda i: (0, 0)),
            pl.BlockSpec((f, m), lambda i: (0, 0)),
            pl.BlockSpec((1, m), lambda i: (0, 0)),
            pl.BlockSpec((1, m), lambda i: (0, 0)),
            pl.BlockSpec((1, m), lambda i: (0, 0)),
        ],
        out_specs=pl.BlockSpec((tn, m), lambda i: (i, 0)),
        out_shape=jax.ShapeDtypeStruct((n, m), jnp.float32),
        compiler_params=_PARALLEL,
    )(ctx, residual, wo, bo, g1, bt1, w1, b1, w2, b2, g2, bt2)


def _mha_attention_kernel(q_ref, k_ref, v_ref, ctx_ref, attn_ref, *, scale):
    # One batch element per grid step, all heads at once (lane/vreg dense,
    # fewer sequential grid iterations).
    q = q_ref[0] * scale                                   # (H, Sq, Dh) pre-scaled
    k = k_ref[0]                                           # (H, Sk, Dh)
    v = v_ref[0]                                           # (H, Sk, Dh)
    # Batched QK^T without materializing a transpose of K.
    s = jnp.einsum('hqd,hkd->hqk', q.astype(MATMUL_DTYPE), k.astype(MATMUL_DTYPE),
                   preferred_element_type=jnp.float32)     # (H, Sq, Sk)
    m = jnp.max(s, axis=-1, keepdims=True)
    e = jnp.exp(s - m)
    denom = jnp.sum(e, axis=-1, keepdims=True)
    p = e * pl.reciprocal(denom, approx=True)              # softmax(dim=-1), EUP recip
    attn_ref[0] = p
    ctx_ref[0] = jnp.einsum('hqk,hkd->hqd', p.astype(MATMUL_DTYPE),
                            v.astype(MATMUL_DTYPE),
                            preferred_element_type=jnp.float32)


def scaled_dot_product_attention(q, k, v, scale):
    # q: (B, H, Sq, Dh), k/v: (B, H, Sk, Dh)
    b, h, sq, dh = q.shape
    sk = k.shape[2]
    kernel = functools.partial(_mha_attention_kernel, scale=scale)
    ctx, attn = pl.pallas_call(
        kernel,
        grid=(b,),
        in_specs=[
            pl.BlockSpec((1, h, sq, dh), lambda i: (i, 0, 0, 0)),
            pl.BlockSpec((1, h, sk, dh), lambda i: (i, 0, 0, 0)),
            pl.BlockSpec((1, h, sk, dh), lambda i: (i, 0, 0, 0)),
        ],
        out_specs=[
            pl.BlockSpec((1, h, sq, dh), lambda i: (i, 0, 0, 0)),
            pl.BlockSpec((1, h, sq, sk), lambda i: (i, 0, 0, 0)),
        ],
        out_shape=(
            jax.ShapeDtypeStruct((b, h, sq, dh), jnp.float32),
            jax.ShapeDtypeStruct((b, h, sq, sk), jnp.float32),
        ),
        compiler_params=_PARALLEL,
    )(q, k, v)
    return ctx, attn


# --------------------------- decoder layer glue ----------------------------

def decoder_layer(params, dec_input, enc_output, num_heads):
    # Mirrors decoderLayer.forward; dropout=0 -> no-op.  Both attention calls
    # share the same weights (single self.attention module in the reference).
    p = params["attn"]
    f = params["ffn"]
    b, sq, m = dec_input.shape
    sk_enc = enc_output.shape[1]
    dh = m // num_heads
    scale = float(dh) ** -0.5

    dec_flat = dec_input.reshape(-1, m)
    enc_flat = enc_output.reshape(-1, m)

    # ---- self attention: fused QKV projection (one HBM read of dec_input) ----
    qkv = linear(dec_flat,
                 jnp.concatenate([p["wq"], p["wk"], p["wv"]], axis=1),
                 jnp.concatenate([p["bq"], p["bk"], p["bv"]], axis=1))
    q_p, k_p, v_p = qkv[:, :m], qkv[:, m:2 * m], qkv[:, 2 * m:]

    # torch's row-major `.view(B*H, -1, Dh)` on a (B, S, M) tensor is a flat
    # reinterpretation; reshape to (B, H, S, Dh) is the identical flat layout
    # (leading-dim split only), so semantics match exactly.
    q4 = q_p.reshape(b, num_heads, sq, dh)
    k4 = k_p.reshape(b, num_heads, sq, dh)
    v4 = v_p.reshape(b, num_heads, sq, dh)
    ctx_s, self_attn = scaled_dot_product_attention(q4, k4, v4, scale)

    # Output projection + residual + LayerNorm, with the cross-attention Q
    # projection fused into the same kernel (dec_output consumed in place).
    dec1_flat, q_cross = out_proj_ln_q(
        ctx_s.reshape(-1, m), dec_flat,                    # torch .view(B,-1,M)
        p["wo"], p["bo"], p["ln_g"], p["ln_b"], p["wq"], p["bq"])

    # ---- cross attention: fused KV projection of enc_output ----
    kv = linear(enc_flat,
                jnp.concatenate([p["wk"], p["wv"]], axis=1),
                jnp.concatenate([p["bk"], p["bv"]], axis=1))
    k_c, v_c = kv[:, :m], kv[:, m:]

    q4c = q_cross.reshape(b, num_heads, sq, dh)
    k4c = k_c.reshape(b, num_heads, sk_enc, dh)
    v4c = v_c.reshape(b, num_heads, sk_enc, dh)
    ctx_c, enc_attn = scaled_dot_product_attention(q4c, k4c, v4c, scale)

    # Cross-attn output projection + residual + LN fused with the whole FFN
    # (+ its residual + LN); the intermediate dec_output never hits HBM.
    out_flat = out_proj_ln_ffn_ln(
        ctx_c.reshape(-1, m), dec1_flat,
        p["wo"], p["bo"], p["ln_g"], p["ln_b"],
        f["w1"], f["b1"], f["w2"], f["b2"], f["ln_g"], f["ln_b"])

    output = out_flat.reshape(b, sq, m)
    return (output,
            self_attn.reshape(b * num_heads, sq, sq),
            enc_attn.reshape(b * num_heads, sq, sk_enc))


def init_params(key, model_dim, num_heads, ffn_dim):
    ks = jax.random.split(key, 8)

    def w(k, shape):
        return jax.random.normal(k, shape, jnp.float32) * 0.02

    attn = {
        "wq": w(ks[0], (model_dim, model_dim)), "bq": jnp.zeros((1, model_dim), jnp.float32),
        "wk": w(ks[1], (model_dim, model_dim)), "bk": jnp.zeros((1, model_dim), jnp.float32),
        "wv": w(ks[2], (model_dim, model_dim)), "bv": jnp.zeros((1, model_dim), jnp.float32),
        "wo": w(ks[3], (model_dim, model_dim)), "bo": jnp.zeros((1, model_dim), jnp.float32),
        "ln_g": jnp.ones((1, model_dim), jnp.float32),
        "ln_b": jnp.zeros((1, model_dim), jnp.float32),
    }
    ffn = {
        # Conv1d(model_dim, ffn_dim, 1) weight (F, M, 1) == linear (M, F) here.
        "w1": w(ks[4], (model_dim, ffn_dim)), "b1": jnp.zeros((1, ffn_dim), jnp.float32),
        "w2": w(ks[5], (ffn_dim, model_dim)), "b2": jnp.zeros((1, model_dim), jnp.float32),
        "ln_g": jnp.ones((1, model_dim), jnp.float32),
        "ln_b": jnp.zeros((1, model_dim), jnp.float32),
    }
    return {"attn": attn, "ffn": ffn}


if __name__ == "__main__":
    # Small, module-consistent shapes.
    B, S_DEC, S_ENC = 2, 8, 8
    MODEL_DIM, NUM_HEADS, FFN_DIM = 32, 4, 64

    root = jax.random.PRNGKey(0)
    k_param, k_dec, k_enc = jax.random.split(root, 3)
    params = init_params(k_param, MODEL_DIM, NUM_HEADS, FFN_DIM)

    dec_input = jax.random.normal(k_dec, (B, S_DEC, MODEL_DIM), jnp.float32)
    enc_output = jax.random.normal(k_enc, (B, S_ENC, MODEL_DIM), jnp.float32)

    fn = jax.jit(functools.partial(decoder_layer, num_heads=NUM_HEADS))
    output, self_attn, enc_attn = fn(params, dec_input, enc_output)
    jax.block_until_ready((output, self_attn, enc_attn))

    # Output sequence length follows the decoder query length (S_DEC).
    assert output.shape == (B, S_DEC, MODEL_DIM)
    assert self_attn.shape == (B * NUM_HEADS, S_DEC, S_DEC)
    assert enc_attn.shape == (B * NUM_HEADS, S_DEC, S_ENC)
    assert bool(jnp.isfinite(output).all())
    print("KERNEL_OK")
</pallas_src>

<mosaic_0001>
module attributes {stable_mosaic.version = 11 : i64} {
  func.func @_linear_kernel(%arg0: i32, %arg1: memref<16x32xf32, #tpu.memory_space<vmem>>, %arg2: memref<32x64xf32, #tpu.memory_space<vmem>>, %arg3: memref<1x64xf32, #tpu.memory_space<vmem>>, %arg4: memref<16x64xf32, #tpu.memory_space<vmem>>) attributes {dimension_semantics = [#tpu.dimension_semantics<parallel>], iteration_bounds = array<i64: 1>, scalar_prefetch = 0 : i64, scratch_operands = 0 : i64, tpu.core_type = #tpu.core_type<tc>, window_params = [{transform_indices = @transform_0, window_bounds = array<i64: 16, 32>}, {pipeline_mode = #tpu.pipeline_mode<synchronous>, transform_indices = @transform_1, window_bounds = array<i64: 32, 64>}, {pipeline_mode = #tpu.pipeline_mode<synchronous>, transform_indices = @transform_2, window_bounds = array<i64: 1, 64>}, {transform_indices = @transform_3, window_bounds = array<i64: 16, 64>}]} {
    %c0 = arith.constant 0 : index
    %c0_0 = arith.constant 0 : index
    %0 = vector.load %arg1[%c0, %c0_0] : memref<16x32xf32, #tpu.memory_space<vmem>>, vector<16x32xf32>
    %c0_1 = arith.constant 0 : index
    %c0_2 = arith.constant 0 : index
    %1 = vector.load %arg2[%c0_1, %c0_2] : memref<32x64xf32, #tpu.memory_space<vmem>>, vector<32x64xf32>
    %cst = arith.constant dense<0.000000e+00> : vector<16x64xf32>
    %2 = tpu.matmul %0, %1, %cst {dimension_numbers = #tpu.dot_dimension_numbers<[1], [0], [0], [1], [0, 0, 1, 1], [], []>} : vector<16x32xf32>, vector<32x64xf32>, vector<16x64xf32> -> vector<16x64xf32>
    %c0_3 = arith.constant 0 : index
    %c0_4 = arith.constant 0 : index
    %3 = vector.load %arg3[%c0_3, %c0_4] : memref<1x64xf32, #tpu.memory_space<vmem>>, vector<1x64xf32>
    %4 = vector.broadcast %3 : vector<1x64xf32> to vector<16x64xf32>
    %5 = arith.addf %2, %4 : vector<16x64xf32>
    %c0_5 = arith.constant 0 : index
    %c0_6 = arith.constant 0 : index
    %6 = vector.load %arg4[%c0_5, %c0_6] : memref<16x64xf32, #tpu.memory_space<vmem>>, vector<16x64xf32>
    tpu.vector_store %arg4[%c0_5, %c0_6], %5 {strides = array<i32>} : memref<16x64xf32, #tpu.memory_space<vmem>>, vector<16x64xf32>,
    return
  }
  func.func @transform_0(%arg0: i32) -> (i32, i32) {
    %c0_i32 = arith.constant 0 : i32
    %c0_i32_0 = arith.constant 0 : i32
    return %arg0, %c0_i32 : i32, i32
  }
  func.func @transform_1(%arg0: i32) -> (i32, i32) {
    %c0_i32 = arith.constant 0 : i32
    %c0_i32_0 = arith.constant 0 : i32
    %c0_i32_1 = arith.constant 0 : i32
    return %c0_i32, %c0_i32_0 : i32, i32
  }
  func.func @transform_2(%arg0: i32) -> (i32, i32) {
    %c0_i32 = arith.constant 0 : i32
    %c0_i32_0 = arith.constant 0 : i32
    %c0_i32_1 = arith.constant 0 : i32
    return %c0_i32, %c0_i32_0 : i32, i32
  }
  func.func @transform_3(%arg0: i32) -> (i32, i32) {
    %c0_i32 = arith.constant 0 : i32
    %c0_i32_0 = arith.constant 0 : i32
    return %arg0, %c0_i32 : i32, i32
  }
}

module attributes {stable_mosaic.version = 11 : i64} {
  func.func @_outproj_ln_q_kernel(%arg0: i32, %arg1: memref<16x32xf32, #tpu.memory_space<vmem>>, %arg2: memref<16x32xf32, #tpu.memory_space<vmem>>, %arg3: memref<32x32xf32, #tpu.memory_space<vmem>>, %arg4: memref<1x32xf32, #tpu.memory_space<vmem>>, %arg5: memref<1x32xf32, #tpu.memory_space<vmem>>, %arg6: memref<1x32xf32, #tpu.memory_space<vmem>>, %arg7: memref<32x32xf32, #tpu.memory_space<vmem>>, %arg8: memref<1x32xf32, #tpu.memory_space<vmem>>, %arg9: memref<16x32xf32, #tpu.memory_space<vmem>>, %arg10: memref<16x32xf32, #tpu.memory_space<vmem>>) attributes {dimension_semantics = [#tpu.dimension_semantics<parallel>], iteration_bounds = array<i64: 1>, scalar_prefetch = 0 : i64, scratch_operands = 0 : i64, tpu.core_type = #tpu.core_type<tc>, window_params = [{transform_indices = @transform_0, window_bounds = array<i64: 16, 32>}, {transform_indices = @transform_1, window_bounds = array<i64: 16, 32>}, {pipeline_mode = #tpu.pipeline_mode<synchronous>, transform_indices = @transform_2, window_bounds = array<i64: 32, 32>}, {pipeline_mode = #tpu.pipeline_mode<synchronous>, transform_indices = @transform_3, window_bounds = array<i64: 1, 32>}, {pipeline_mode = #tpu.pipeline_mode<synchronous>, transform_indices = @transform_4, window_bounds = array<i64: 1, 32>}, {pipeline_mode = #tpu.pipeline_mode<synchronous>, transform_indices = @transform_5, window_bounds = array<i64: 1, 32>}, {pipeline_mode = #tpu.pipeline_mode<synchronous>, transform_indices = @transform_6, window_bounds = array<i64: 32, 32>}, {pipeline_mode = #tpu.pipeline_mode<synchronous>, transform_indices = @transform_7, window_bounds = array<i64: 1, 32>}, {transform_indices = @transform_8, window_bounds = array<i64: 16, 32>}, {transform_indices = @transform_9, window_bounds = array<i64: 16, 32>}]} {
    %c0 = arith.constant 0 : index
    %c0_0 = arith.constant 0 : index
    %0 = vector.load %arg2[%c0, %c0_0] : memref<16x32xf32, #tpu.memory_space<vmem>>, vector<16x32xf32>
    %c0_1 = arith.constant 0 : index
    %c0_2 = arith.constant 0 : index
    %1 = vector.load %arg1[%c0_1, %c0_2] : memref<16x32xf32, #tpu.memory_space<vmem>>, vector<16x32xf32>
    %c0_3 = arith.constant 0 : index
    %c0_4 = arith.constant 0 : index
    %2 = vector.load %arg3[%c0_3, %c0_4] : memref<32x32xf32, #tpu.memory_space<vmem>>, vector<32x32xf32>
    %cst = arith.constant dense<0.000000e+00> : vector<16x32xf32>
    %3 = tpu.matmul %1, %2, %cst {dimension_numbers = #tpu.dot_dimension_numbers<[1], [0], [0], [1], [0, 0, 1, 1], [], []>} : vector<16x32xf32>, vector<32x32xf32>, vector<16x32xf32> -> vector<16x32xf32>
    %4 = arith.addf %0, %3 : vector<16x32xf32>
    %c0_5 = arith.constant 0 : index
    %c0_6 = arith.constant 0 : index
    %5 = vector.load %arg4[%c0_5, %c0_6] : memref<1x32xf32, #tpu.memory_space<vmem>>, vector<1x32xf32>
    %6 = vector.broadcast %5 : vector<1x32xf32> to vector<16x32xf32>
    %7 = arith.addf %4, %6 : vector<16x32xf32>
    %c0_7 = arith.constant 0 : index
    %c0_8 = arith.constant 0 : index
    %8 = vector.load %arg5[%c0_7, %c0_8] : memref<1x32xf32, #tpu.memory_space<vmem>>, vector<1x32xf32>
    %c0_9 = arith.constant 0 : index
    %c0_10 = arith.constant 0 : index
    %9 = vector.load %arg6[%c0_9, %c0_10] : memref<1x32xf32, #tpu.memory_space<vmem>>, vector<1x32xf32>
    %cst_11 = arith.constant dense<0.000000e+00> : vector<16xf32>
    %10 = vector.multi_reduction <add>, %7, %cst_11 [1] : vector<16x32xf32> to vector<16xf32>
    %11 = vector.shape_cast %10 : vector<16xf32> to vector<16x1xf32>
    %cst_12 = arith.constant 3.200000e+01 : f32
    %12 = vector.broadcast %cst_12 : f32 to vector<16x1xf32>
    %13 = arith.divf %11, %12 : vector<16x1xf32>
    %14 = vector.broadcast %13 : vector<16x1xf32> to vector<16x32xf32>
    %15 = arith.subf %7, %14 : vector<16x32xf32>
    %16 = arith.mulf %15, %15 : vector<16x32xf32>
    %cst_13 = arith.constant dense<0.000000e+00> : vector<16xf32>
    %17 = vector.multi_reduction <add>, %16, %cst_13 [1] : vector<16x32xf32> to vector<16xf32>
    %18 = vector.shape_cast %17 : vector<16xf32> to vector<16x1xf32>
    %cst_14 = arith.constant 3.200000e+01 : f32
    %19 = vector.broadcast %cst_14 : f32 to vector<16x1xf32>
    %20 = arith.divf %18, %19 : vector<16x1xf32>
    %21 = vector.broadcast %13 : vector<16x1xf32> to vector<16x32xf32>
    %22 = arith.subf %7, %21 : vector<16x32xf32>
    %cst_15 = arith.constant 9.99999974E-6 : f32
    %23 = vector.broadcast %cst_15 : f32 to vector<16x1xf32>
    %24 = arith.addf %20, %23 : vector<16x1xf32>
    %25 = math.rsqrt %24 : vector<16x1xf32>
    %26 = vector.broadcast %25 : vector<16x1xf32> to vector<16x32xf32>
    %27 = arith.mulf %22, %26 : vector<16x32xf32>
    %28 = vector.broadcast %8 : vector<1x32xf32> to vector<16x32xf32>
    %29 = arith.mulf %27, %28 : vector<16x32xf32>
    %30 = vector.broadcast %9 : vector<1x32xf32> to vector<16x32xf32>
    %31 = arith.addf %29, %30 : vector<16x32xf32>
    %c0_16 = arith.constant 0 : index
    %c0_17 = arith.constant 0 : index
    %32 = vector.load %arg9[%c0_16, %c0_17] : memref<16x32xf32, #tpu.memory_space<vmem>>, vector<16x32xf32>
    tpu.vector_store %arg9[%c0_16, %c0_17], %31 {strides = array<i32>} : memref<16x32xf32, #tpu.memory_space<vmem>>, vector<16x32xf32>,
    %c0_18 = arith.constant 0 : index
    %c0_19 = arith.constant 0 : index
    %33 = vector.load %arg7[%c0_18, %c0_19] : memref<32x32xf32, #tpu.memory_space<vmem>>, vector<32x32xf32>
    %cst_20 = arith.constant dense<0.000000e+00> : vector<16x32xf32>
    %34 = tpu.matmul %31, %33, %cst_20 {dimension_numbers = #tpu.dot_dimension_numbers<[1], [0], [0], [1], [0, 0, 1, 1], [], []>} : vector<16x32xf32>, vector<32x32xf32>, vector<16x32xf32> -> vector<16x32xf32>
    %c0_21 = arith.constant 0 : index
    %c0_22 = arith.constant 0 : index
    %35 = vector.load %arg8[%c0_21, %c0_22] : memref<1x32xf32, #tpu.memory_space<vmem>>, vector<1x32xf32>
    %36 = vector.broadcast %35 : vector<1x32xf32> to vector<16x32xf32>
    %37 = arith.addf %34, %36 : vector<16x32xf32>
    %c0_23 = arith.constant 0 : index
    %c0_24 = arith.constant 0 : index
    %38 = vector.load %arg10[%c0_23, %c0_24] : memref<16x32xf32, #tpu.memory_space<vmem>>, vector<16x32xf32>
    tpu.vector_store %arg10[%c0_23, %c0_24], %37 {strides = array<i32>} : memref<16x32xf32, #tpu.memory_space<vmem>>, vector<16x32xf32>,
    return
  }
  func.func @transform_0(%arg0: i32) -> (i32, i32) {
    %c0_i32 = arith.constant 0 : i32
    %c0_i32_0 = arith.constant 0 : i32
    return %arg0, %c0_i32 : i32, i32
  }
  func.func @transform_1(%arg0: i32) -> (i32, i32) {
    %c0_i32 = arith.constant 0 : i32
    %c0_i32_0 = arith.constant 0 : i32
    return %arg0, %c0_i32 : i32, i32
  }
  func.func @transform_2(%arg0: i32) -> (i32, i32) {
    %c0_i32 = arith.constant 0 : i32
    %c0_i32_0 = arith.constant 0 : i32
    %c0_i32_1 = arith.constant 0 : i32
    return %c0_i32, %c0_i32_0 : i32, i32
  }
  func.func @transform_3(%arg0: i32) -> (i32, i32) {
    %c0_i32 = arith.constant 0 : i32
    %c0_i32_0 = arith.constant 0 : i32
    %c0_i32_1 = arith.constant 0 : i32
    return %c0_i32, %c0_i32_0 : i32, i32
  }
  func.func @transform_4(%arg0: i32) -> (i32, i32) {
    %c0_i32 = arith.constant 0 : i32
    %c0_i32_0 = arith.constant 0 : i32
    %c0_i32_1 = arith.constant 0 : i32
    return %c0_i32, %c0_i32_0 : i32, i32
  }
  func.func @transform_5(%arg0: i32) -> (i32, i32) {
    %c0_i32 = arith.constant 0 : i32
    %c0_i32_0 = arith.constant 0 : i32
    %c0_i32_1 = arith.constant 0 : i32
    return %c0_i32, %c0_i32_0 : i32, i32
  }
  func.func @transform_6(%arg0: i32) -> (i32, i32) {
    %c0_i32 = arith.constant 0 : i32
    %c0_i32_0 = arith.constant 0 : i32
    %c0_i32_1 = arith.constant 0 : i32
    return %c0_i32, %c0_i32_0 : i32, i32
  }
  func.func @transform_7(%arg0: i32) -> (i32, i32) {
    %c0_i32 = arith.constant 0 : i32
    %c0_i32_0 = arith.constant 0 : i32
    %c0_i32_1 = arith.constant 0 : i32
    return %c0_i32, %c0_i32_0 : i32, i32
  }
  func.func @transform_8(%arg0: i32) -> (i32, i32) {
    %c0_i32 = arith.constant 0 : i32
    %c0_i32_0 = arith.constant 0 : i32
    return %arg0, %c0_i32 : i32, i32
  }
  func.func @transform_9(%arg0: i32) -> (i32, i32) {
    %c0_i32 = arith.constant 0 : i32
    %c0_i32_0 = arith.constant 0 : i32
    return %arg0, %c0_i32 : i32, i32
  }
}

module attributes {stable_mosaic.version = 11 : i64} {
  func.func @_linear_kernel(%arg0: i32, %arg1: memref<16x32xf32, #tpu.memory_space<vmem>>, %arg2: memref<32x96xf32, #tpu.memory_space<vmem>>, %arg3: memref<1x96xf32, #tpu.memory_space<vmem>>, %arg4: memref<16x96xf32, #tpu.memory_space<vmem>>) attributes {dimension_semantics = [#tpu.dimension_semantics<parallel>], iteration_bounds = array<i64: 1>, scalar_prefetch = 0 : i64, scratch_operands = 0 : i64, tpu.core_type = #tpu.core_type<tc>, window_params = [{transform_indices = @transform_0, window_bounds = array<i64: 16, 32>}, {pipeline_mode = #tpu.pipeline_mode<synchronous>, transform_indices = @transform_1, window_bounds = array<i64: 32, 96>}, {pipeline_mode = #tpu.pipeline_mode<synchronous>, transform_indices = @transform_2, window_bounds = array<i64: 1, 96>}, {transform_indices = @transform_3, window_bounds = array<i64: 16, 96>}]} {
    %c0 = arith.constant 0 : index
    %c0_0 = arith.constant 0 : index
    %0 = vector.load %arg1[%c0, %c0_0] : memref<16x32xf32, #tpu.memory_space<vmem>>, vector<16x32xf32>
    %c0_1 = arith.constant 0 : index
    %c0_2 = arith.constant 0 : index
    %1 = vector.load %arg2[%c0_1, %c0_2] : memref<32x96xf32, #tpu.memory_space<vmem>>, vector<32x96xf32>
    %cst = arith.constant dense<0.000000e+00> : vector<16x96xf32>
    %2 = tpu.matmul %0, %1, %cst {dimension_numbers = #tpu.dot_dimension_numbers<[1], [0], [0], [1], [0, 0, 1, 1], [], []>} : vector<16x32xf32>, vector<32x96xf32>, vector<16x96xf32> -> vector<16x96xf32>
    %c0_3 = arith.constant 0 : index
    %c0_4 = arith.constant 0 : index
    %3 = vector.load %arg3[%c0_3, %c0_4] : memref<1x96xf32, #tpu.memory_space<vmem>>, vector<1x96xf32>
    %4 = vector.broadcast %3 : vector<1x96xf32> to vector<16x96xf32>
    %5 = arith.addf %2, %4 : vector<16x96xf32>
    %c0_5 = arith.constant 0 : index
    %c0_6 = arith.constant 0 : index
    %6 = vector.load %arg4[%c0_5, %c0_6] : memref<16x96xf32, #tpu.memory_space<vmem>>, vector<16x96xf32>
    tpu.vector_store %arg4[%c0_5, %c0_6], %5 {strides = array<i32>} : memref<16x96xf32, #tpu.memory_space<vmem>>, vector<16x96xf32>,
    return
  }
  func.func @transform_0(%arg0: i32) -> (i32, i32) {
    %c0_i32 = arith.constant 0 : i32
    %c0_i32_0 = arith.constant 0 : i32
    return %arg0, %c0_i32 : i32, i32
  }
  func.func @transform_1(%arg0: i32) -> (i32, i32) {
    %c0_i32 = arith.constant 0 : i32
    %c0_i32_0 = arith.constant 0 : i32
    %c0_i32_1 = arith.constant 0 : i32
    return %c0_i32, %c0_i32_0 : i32, i32
  }
  func.func @transform_2(%arg0: i32) -> (i32, i32) {
    %c0_i32 = arith.constant 0 : i32
    %c0_i32_0 = arith.constant 0 : i32
    %c0_i32_1 = arith.constant 0 : i32
    return %c0_i32, %c0_i32_0 : i32, i32
  }
  func.func @transform_3(%arg0: i32) -> (i32, i32) {
    %c0_i32 = arith.constant 0 : i32
    %c0_i32_0 = arith.constant 0 : i32
    return %arg0, %c0_i32 : i32, i32
  }
}

module attributes {stable_mosaic.version = 11 : i64} {
  func.func @_mha_attention_kernel(%arg0: i32, %arg1: memref<1x4x8x8xf32, #tpu.memory_space<vmem>>, %arg2: memref<1x4x8x8xf32, #tpu.memory_space<vmem>>, %arg3: memref<1x4x8x8xf32, #tpu.memory_space<vmem>>, %arg4: memref<1x4x8x8xf32, #tpu.memory_space<vmem>>, %arg5: memref<1x4x8x8xf32, #tpu.memory_space<vmem>>) attributes {dimension_semantics = [#tpu.dimension_semantics<parallel>], iteration_bounds = array<i64: 2>, scalar_prefetch = 0 : i64, scratch_operands = 0 : i64, tpu.core_type = #tpu.core_type<tc>, window_params = [{transform_indices = @transform_0, window_bounds = array<i64: 1, 4, 8, 8>}, {transform_indices = @transform_1, window_bounds = array<i64: 1, 4, 8, 8>}, {transform_indices = @transform_2, window_bounds = array<i64: 1, 4, 8, 8>}, {transform_indices = @transform_3, window_bounds = array<i64: 1, 4, 8, 8>}, {transform_indices = @transform_4, window_bounds = array<i64: 1, 4, 8, 8>}]} {
    %c0 = arith.constant 0 : index
    %c0_0 = arith.constant 0 : index
    %c0_1 = arith.constant 0 : index
    %c0_2 = arith.constant 0 : index
    %0 = vector.load %arg1[%c0, %c0_0, %c0_1, %c0_2] : memref<1x4x8x8xf32, #tpu.memory_space<vmem>>, vector<1x4x8x8xf32>
    %1 = vector.shape_cast %0 : vector<1x4x8x8xf32> to vector<4x8x8xf32>
    %cst = arith.constant 0.353553385 : f32
    %2 = vector.broadcast %cst : f32 to vector<4x8x8xf32>
    %3 = arith.mulf %1, %2 : vector<4x8x8xf32>
    %c0_3 = arith.constant 0 : index
    %c0_4 = arith.constant 0 : index
    %c0_5 = arith.constant 0 : index
    %c0_6 = arith.constant 0 : index
    %4 = vector.load %arg2[%c0_3, %c0_4, %c0_5, %c0_6] : memref<1x4x8x8xf32, #tpu.memory_space<vmem>>, vector<1x4x8x8xf32>
    %5 = vector.shape_cast %4 : vector<1x4x8x8xf32> to vector<4x8x8xf32>
    %c0_7 = arith.constant 0 : index
    %c0_8 = arith.constant 0 : index
    %c0_9 = arith.constant 0 : index
    %c0_10 = arith.constant 0 : index
    %6 = vector.load %arg3[%c0_7, %c0_8, %c0_9, %c0_10] : memref<1x4x8x8xf32, #tpu.memory_space<vmem>>, vector<1x4x8x8xf32>
    %7 = vector.shape_cast %6 : vector<1x4x8x8xf32> to vector<4x8x8xf32>
    "tpu.trace_start"() <{level = 10 : i32, message = "hqd,hkd->hqk"}> : () -> ()
    %cst_11 = arith.constant dense<0.000000e+00> : vector<4x8x8xf32>
    %8 = tpu.matmul %3, %5, %cst_11 {dimension_numbers = #tpu.dot_dimension_numbers<[2], [2], [1], [1], [0, 0, 0, 1, 1, 1], [0], [0]>} : vector<4x8x8xf32>, vector<4x8x8xf32>, vector<4x8x8xf32> -> vector<4x8x8xf32>
    "tpu.trace_stop"() : () -> ()
    %cst_12 = arith.constant dense<0xFF800000> : vector<4x8xf32>
    %9 = vector.multi_reduction <maximumf>, %8, %cst_12 [2] : vector<4x8x8xf32> to vector<4x8xf32>
    %10 = vector.shape_cast %9 : vector<4x8xf32> to vector<4x8x1xf32>
    %11 = vector.broadcast %10 : vector<4x8x1xf32> to vector<4x8x8xf32>
    %12 = arith.subf %8, %11 : vector<4x8x8xf32>
    %13 = math.exp %12 : vector<4x8x8xf32>
    %cst_13 = arith.constant dense<0.000000e+00> : vector<4x8xf32>
    %14 = vector.multi_reduction <add>, %13, %cst_13 [2] : vector<4x8x8xf32> to vector<4x8xf32>
    %15 = vector.shape_cast %14 : vector<4x8xf32> to vector<4x8x1xf32>
    %16 = tpu.reciprocal %15 {approx = true} : vector<4x8x1xf32> -> vector<4x8x1xf32>
    %17 = vector.broadcast %16 : vector<4x8x1xf32> to vector<4x8x8xf32>
    %18 = arith.mulf %13, %17 : vector<4x8x8xf32>
    %c0_14 = arith.constant 0 : index
    %c0_15 = arith.constant 0 : index
    %c0_16 = arith.constant 0 : index
    %c0_17 = arith.constant 0 : index
    %19 = vector.load %arg5[%c0_14, %c0_15, %c0_16, %c0_17] : memref<1x4x8x8xf32, #tpu.memory_space<vmem>>, vector<1x4x8x8xf32>
    %20 = vector.shape_cast %19 : vector<1x4x8x8xf32> to vector<4x8x8xf32>
    %21 = vector.shape_cast %18 : vector<4x8x8xf32> to vector<1x4x8x8xf32>
    tpu.vector_store %arg5[%c0_14, %c0_15, %c0_16, %c0_17], %21 {strides = array<i32>} : memref<1x4x8x8xf32, #tpu.memory_space<vmem>>, vector<1x4x8x8xf32>,
    "tpu.trace_start"() <{level = 10 : i32, message = "hqk,hkd->hqd"}> : () -> ()
    %cst_18 = arith.constant dense<0.000000e+00> : vector<4x8x8xf32>
    %22 = tpu.matmul %18, %7, %cst_18 {dimension_numbers = #tpu.dot_dimension_numbers<[2], [1], [1], [2], [0, 0, 0, 1, 1, 2], [0], [0]>} : vector<4x8x8xf32>, vector<4x8x8xf32>, vector<4x8x8xf32> -> vector<4x8x8xf32>
    "tpu.trace_stop"() : () -> ()
    %c0_19 = arith.constant 0 : index
    %c0_20 = arith.constant 0 : index
    %c0_21 = arith.constant 0 : index
    %c0_22 = arith.constant 0 : index
    %23 = vector.load %arg4[%c0_19, %c0_20, %c0_21, %c0_22] : memref<1x4x8x8xf32, #tpu.memory_space<vmem>>, vector<1x4x8x8xf32>
    %24 = vector.shape_cast %23 : vector<1x4x8x8xf32> to vector<4x8x8xf32>
    %25 = vector.shape_cast %22 : vector<4x8x8xf32> to vector<1x4x8x8xf32>
    tpu.vector_store %arg4[%c0_19, %c0_20, %c0_21, %c0_22], %25 {strides = array<i32>} : memref<1x4x8x8xf32, #tpu.memory_space<vmem>>, vector<1x4x8x8xf32>,
    return
  }
  func.func @transform_0(%arg0: i32) -> (i32, i32, i32, i32) {
    %c0_i32 = arith.constant 0 : i32
    %c0_i32_0 = arith.constant 0 : i32
    %c0_i32_1 = arith.constant 0 : i32
    %c0_i32_2 = arith.constant 0 : i32
    return %arg0, %c0_i32, %c0_i32_0, %c0_i32_1 : i32, i32, i32, i32
  }
  func.func @transform_1(%arg0: i32) -> (i32, i32, i32, i32) {
    %c0_i32 = arith.constant 0 : i32
    %c0_i32_0 = arith.constant 0 : i32
    %c0_i32_1 = arith.constant 0 : i32
    %c0_i32_2 = arith.constant 0 : i32
    return %arg0, %c0_i32, %c0_i32_0, %c0_i32_1 : i32, i32, i32, i32
  }
  func.func @transform_2(%arg0: i32) -> (i32, i32, i32, i32) {
    %c0_i32 = arith.constant 0 : i32
    %c0_i32_0 = arith.constant 0 : i32
    %c0_i32_1 = arith.constant 0 : i32
    %c0_i32_2 = arith.constant 0 : i32
    return %arg0, %c0_i32, %c0_i32_0, %c0_i32_1 : i32, i32, i32, i32
  }
  func.func @transform_3(%arg0: i32) -> (i32, i32, i32, i32) {
    %c0_i32 = arith.constant 0 : i32
    %c0_i32_0 = arith.constant 0 : i32
    %c0_i32_1 = arith.constant 0 : i32
    %c0_i32_2 = arith.constant 0 : i32
    return %arg0, %c0_i32, %c0_i32_0, %c0_i32_1 : i32, i32, i32, i32
  }
  func.func @transform_4(%arg0: i32) -> (i32, i32, i32, i32) {
    %c0_i32 = arith.constant 0 : i32
    %c0_i32_0 = arith.constant 0 : i32
    %c0_i32_1 = arith.constant 0 : i32
    %c0_i32_2 = arith.constant 0 : i32
    return %arg0, %c0_i32, %c0_i32_0, %c0_i32_1 : i32, i32, i32, i32
  }
}

module attributes {stable_mosaic.version = 11 : i64} {
  func.func @_outproj_ln_ffn_ln_kernel(%arg0: i32, %arg1: memref<16x32xf32, #tpu.memory_space<vmem>>, %arg2: memref<16x32xf32, #tpu.memory_space<vmem>>, %arg3: memref<32x32xf32, #tpu.memory_space<vmem>>, %arg4: memref<1x32xf32, #tpu.memory_space<vmem>>, %arg5: memref<1x32xf32, #tpu.memory_space<vmem>>, %arg6: memref<1x32xf32, #tpu.memory_space<vmem>>, %arg7: memref<32x64xf32, #tpu.memory_space<vmem>>, %arg8: memref<1x64xf32, #tpu.memory_space<vmem>>, %arg9: memref<64x32xf32, #tpu.memory_space<vmem>>, %arg10: memref<1x32xf32, #tpu.memory_space<vmem>>, %arg11: memref<1x32xf32, #tpu.memory_space<vmem>>, %arg12: memref<1x32xf32, #tpu.memory_space<vmem>>, %arg13: memref<16x32xf32, #tpu.memory_space<vmem>>) attributes {dimension_semantics = [#tpu.dimension_semantics<parallel>], iteration_bounds = array<i64: 1>, scalar_prefetch = 0 : i64, scratch_operands = 0 : i64, tpu.core_type = #tpu.core_type<tc>, window_params = [{transform_indices = @transform_0, window_bounds = array<i64: 16, 32>}, {transform_indices = @transform_1, window_bounds = array<i64: 16, 32>}, {pipeline_mode = #tpu.pipeline_mode<synchronous>, transform_indices = @transform_2, window_bounds = array<i64: 32, 32>}, {pipeline_mode = #tpu.pipeline_mode<synchronous>, transform_indices = @transform_3, window_bounds = array<i64: 1, 32>}, {pipeline_mode = #tpu.pipeline_mode<synchronous>, transform_indices = @transform_4, window_bounds = array<i64: 1, 32>}, {pipeline_mode = #tpu.pipeline_mode<synchronous>, transform_indices = @transform_5, window_bounds = array<i64: 1, 32>}, {pipeline_mode = #tpu.pipeline_mode<synchronous>, transform_indices = @transform_6, window_bounds = array<i64: 32, 64>}, {pipeline_mode = #tpu.pipeline_mode<synchronous>, transform_indices = @transform_7, window_bounds = array<i64: 1, 64>}, {pipeline_mode = #tpu.pipeline_mode<synchronous>, transform_indices = @transform_8, window_bounds = array<i64: 64, 32>}, {pipeline_mode = #tpu.pipeline_mode<synchronous>, transform_indices = @transform_9, window_bounds = array<i64: 1, 32>}, {pipeline_mode = #tpu.pipeline_mode<synchronous>, transform_indices = @transform_10, window_bounds = array<i64: 1, 32>}, {pipeline_mode = #tpu.pipeline_mode<synchronous>, transform_indices = @transform_11, window_bounds = array<i64: 1, 32>}, {transform_indices = @transform_12, window_bounds = array<i64: 16, 32>}]} {
    %c0 = arith.constant 0 : index
    %c0_0 = arith.constant 0 : index
    %0 = vector.load %arg2[%c0, %c0_0] : memref<16x32xf32, #tpu.memory_space<vmem>>, vector<16x32xf32>
    %c0_1 = arith.constant 0 : index
    %c0_2 = arith.constant 0 : index
    %1 = vector.load %arg1[%c0_1, %c0_2] : memref<16x32xf32, #tpu.memory_space<vmem>>, vector<16x32xf32>
    %c0_3 = arith.constant 0 : index
    %c0_4 = arith.constant 0 : index
    %2 = vector.load %arg3[%c0_3, %c0_4] : memref<32x32xf32, #tpu.memory_space<vmem>>, vector<32x32xf32>
    %cst = arith.constant dense<0.000000e+00> : vector<16x32xf32>
    %3 = tpu.matmul %1, %2, %cst {dimension_numbers = #tpu.dot_dimension_numbers<[1], [0], [0], [1], [0, 0, 1, 1], [], []>} : vector<16x32xf32>, vector<32x32xf32>, vector<16x32xf32> -> vector<16x32xf32>
    %4 = arith.addf %0, %3 : vector<16x32xf32>
    %c0_5 = arith.constant 0 : index
    %c0_6 = arith.constant 0 : index
    %5 = vector.load %arg4[%c0_5, %c0_6] : memref<1x32xf32, #tpu.memory_space<vmem>>, vector<1x32xf32>
    %6 = vector.broadcast %5 : vector<1x32xf32> to vector<16x32xf32>
    %7 = arith.addf %4, %6 : vector<16x32xf32>
    %c0_7 = arith.constant 0 : index
    %c0_8 = arith.constant 0 : index
    %8 = vector.load %arg5[%c0_7, %c0_8] : memref<1x32xf32, #tpu.memory_space<vmem>>, vector<1x32xf32>
    %c0_9 = arith.constant 0 : index
    %c0_10 = arith.constant 0 : index
    %9 = vector.load %arg6[%c0_9, %c0_10] : memref<1x32xf32, #tpu.memory_space<vmem>>, vector<1x32xf32>
    %cst_11 = arith.constant dense<0.000000e+00> : vector<16xf32>
    %10 = vector.multi_reduction <add>, %7, %cst_11 [1] : vector<16x32xf32> to vector<16xf32>
    %11 = vector.shape_cast %10 : vector<16xf32> to vector<16x1xf32>
    %cst_12 = arith.constant 3.200000e+01 : f32
    %12 = vector.broadcast %cst_12 : f32 to vector<16x1xf32>
    %13 = arith.divf %11, %12 : vector<16x1xf32>
    %14 = vector.broadcast %13 : vector<16x1xf32> to vector<16x32xf32>
    %15 = arith.subf %7, %14 : vector<16x32xf32>
    %16 = arith.mulf %15, %15 : vector<16x32xf32>
    %cst_13 = arith.constant dense<0.000000e+00> : vector<16xf32>
    %17 = vector.multi_reduction <add>, %16, %cst_13 [1] : vector<16x32xf32> to vector<16xf32>
    %18 = vector.shape_cast %17 : vector<16xf32> to vector<16x1xf32>
    %cst_14 = arith.constant 3.200000e+01 : f32
    %19 = vector.broadcast %cst_14 : f32 to vector<16x1xf32>
    %20 = arith.divf %18, %19 : vector<16x1xf32>
    %21 = vector.broadcast %13 : vector<16x1xf32> to vector<16x32xf32>
    %22 = arith.subf %7, %21 : vector<16x32xf32>
    %cst_15 = arith.constant 9.99999974E-6 : f32
    %23 = vector.broadcast %cst_15 : f32 to vector<16x1xf32>
    %24 = arith.addf %20, %23 : vector<16x1xf32>
    %25 = math.rsqrt %24 : vector<16x1xf32>
    %26 = vector.broadcast %25 : vector<16x1xf32> to vector<16x32xf32>
    %27 = arith.mulf %22, %26 : vector<16x32xf32>
    %28 = vector.broadcast %8 : vector<1x32xf32> to vector<16x32xf32>
    %29 = arith.mulf %27, %28 : vector<16x32xf32>
    %30 = vector.broadcast %9 : vector<1x32xf32> to vector<16x32xf32>
    %31 = arith.addf %29, %30 : vector<16x32xf32>
    %c0_16 = arith.constant 0 : index
    %c0_17 = arith.constant 0 : index
    %32 = vector.load %arg7[%c0_16, %c0_17] : memref<32x64xf32, #tpu.memory_space<vmem>>, vector<32x64xf32>
    %cst_18 = arith.constant dense<0.000000e+00> : vector<16x64xf32>
    %33 = tpu.matmul %31, %32, %cst_18 {dimension_numbers = #tpu.dot_dimension_numbers<[1], [0], [0], [1], [0, 0, 1, 1], [], []>} : vector<16x32xf32>, vector<32x64xf32>, vector<16x64xf32> -> vector<16x64xf32>
    %c0_19 = arith.constant 0 : index
    %c0_20 = arith.constant 0 : index
    %34 = vector.load %arg8[%c0_19, %c0_20] : memref<1x64xf32, #tpu.memory_space<vmem>>, vector<1x64xf32>
    %35 = vector.broadcast %34 : vector<1x64xf32> to vector<16x64xf32>
    %36 = arith.addf %33, %35 : vector<16x64xf32>
    %cst_21 = arith.constant 0.000000e+00 : f32
    %37 = vector.broadcast %cst_21 : f32 to vector<16x64xf32>
    %38 = arith.maximumf %36, %37 : vector<16x64xf32>
    %c0_22 = arith.constant 0 : index
    %c0_23 = arith.constant 0 : index
    %39 = vector.load %arg9[%c0_22, %c0_23] : memref<64x32xf32, #tpu.memory_space<vmem>>, vector<64x32xf32>
    %cst_24 = arith.constant dense<0.000000e+00> : vector<16x32xf32>
    %40 = tpu.matmul %38, %39, %cst_24 {dimension_numbers = #tpu.dot_dimension_numbers<[1], [0], [0], [1], [0, 0, 1, 1], [], []>} : vector<16x64xf32>, vector<64x32xf32>, vector<16x32xf32> -> vector<16x32xf32>
    %41 = arith.addf %31, %40 : vector<16x32xf32>
    %c0_25 = arith.constant 0 : index
    %c0_26 = arith.constant 0 : index
    %42 = vector.load %arg10[%c0_25, %c0_26] : memref<1x32xf32, #tpu.memory_space<vmem>>, vector<1x32xf32>
    %43 = vector.broadcast %42 : vector<1x32xf32> to vector<16x32xf32>
    %44 = arith.addf %41, %43 : vector<16x32xf32>
    %c0_27 = arith.constant 0 : index
    %c0_28 = arith.constant 0 : index
    %45 = vector.load %arg11[%c0_27, %c0_28] : memref<1x32xf32, #tpu.memory_space<vmem>>, vector<1x32xf32>
    %c0_29 = arith.constant 0 : index
    %c0_30 = arith.constant 0 : index
    %46 = vector.load %arg12[%c0_29, %c0_30] : memref<1x32xf32, #tpu.memory_space<vmem>>, vector<1x32xf32>
    %cst_31 = arith.constant dense<0.000000e+00> : vector<16xf32>
    %47 = vector.multi_reduction <add>, %44, %cst_31 [1] : vector<16x32xf32> to vector<16xf32>
    %48 = vector.shape_cast %47 : vector<16xf32> to vector<16x1xf32>
    %cst_32 = arith.constant 3.200000e+01 : f32
    %49 = vector.broadcast %cst_32 : f32 to vector<16x1xf32>
    %50 = arith.divf %48, %49 : vector<16x1xf32>
    %51 = vector.broadcast %50 : vector<16x1xf32> to vector<16x32xf32>
    %52 = arith.subf %44, %51 : vector<16x32xf32>
    %53 = arith.mulf %52, %52 : vector<16x32xf32>
    %cst_33 = arith.constant dense<0.000000e+00> : vector<16xf32>
    %54 = vector.multi_reduction <add>, %53, %cst_33 [1] : vector<16x32xf32> to vector<16xf32>
    %55 = vector.shape_cast %54 : vector<16xf32> to vector<16x1xf32>
    %cst_34 = arith.constant 3.200000e+01 : f32
    %56 = vector.broadcast %cst_34 : f32 to vector<16x1xf32>
    %57 = arith.divf %55, %56 : vector<16x1xf32>
    %58 = vector.broadcast %50 : vector<16x1xf32> to vector<16x32xf32>
    %59 = arith.subf %44, %58 : vector<16x32xf32>
    %cst_35 = arith.constant 9.99999974E-6 : f32
    %60 = vector.broadcast %cst_35 : f32 to vector<16x1xf32>
    %61 = arith.addf %57, %60 : vector<16x1xf32>
    %62 = math.rsqrt %61 : vector<16x1xf32>
    %63 = vector.broadcast %62 : vector<16x1xf32> to vector<16x32xf32>
    %64 = arith.mulf %59, %63 : vector<16x32xf32>
    %65 = vector.broadcast %45 : vector<1x32xf32> to vector<16x32xf32>
    %66 = arith.mulf %64, %65 : vector<16x32xf32>
    %67 = vector.broadcast %46 : vector<1x32xf32> to vector<16x32xf32>
    %68 = arith.addf %66, %67 : vector<16x32xf32>
    %c0_36 = arith.constant 0 : index
    %c0_37 = arith.constant 0 : index
    %69 = vector.load %arg13[%c0_36, %c0_37] : memref<16x32xf32, #tpu.memory_space<vmem>>, vector<16x32xf32>
    tpu.vector_store %arg13[%c0_36, %c0_37], %68 {strides = array<i32>} : memref<16x32xf32, #tpu.memory_space<vmem>>, vector<16x32xf32>,
    return
  }
  func.func @transform_0(%arg0: i32) -> (i32, i32) {
    %c0_i32 = arith.constant 0 : i32
    %c0_i32_0 = arith.constant 0 : i32
    return %arg0, %c0_i32 : i32, i32
  }
  func.func @transform_1(%arg0: i32) -> (i32, i32) {
    %c0_i32 = arith.constant 0 : i32
    %c0_i32_0 = arith.constant 0 : i32
    return %arg0, %c0_i32 : i32, i32
  }
  func.func @transform_2(%arg0: i32) -> (i32, i32) {
    %c0_i32 = arith.constant 0 : i32
    %c0_i32_0 = arith.constant 0 : i32
    %c0_i32_1 = arith.constant 0 : i32
    return %c0_i32, %c0_i32_0 : i32, i32
  }
  func.func @transform_3(%arg0: i32) -> (i32, i32) {
    %c0_i32 = arith.constant 0 : i32
    %c0_i32_0 = arith.constant 0 : i32
    %c0_i32_1 = arith.constant 0 : i32
    return %c0_i32, %c0_i32_0 : i32, i32
  }
  func.func @transform_4(%arg0: i32) -> (i32, i32) {
    %c0_i32 = arith.constant 0 : i32
    %c0_i32_0 = arith.constant 0 : i32
    %c0_i32_1 = arith.constant 0 : i32
    return %c0_i32, %c0_i32_0 : i32, i32
  }
  func.func @transform_5(%arg0: i32) -> (i32, i32) {
    %c0_i32 = arith.constant 0 : i32
    %c0_i32_0 = arith.constant 0 : i32
    %c0_i32_1 = arith.constant 0 : i32
    return %c0_i32, %c0_i32_0 : i32, i32
  }
  func.func @transform_6(%arg0: i32) -> (i32, i32) {
    %c0_i32 = arith.constant 0 : i32
    %c0_i32_0 = arith.constant 0 : i32
    %c0_i32_1 = arith.constant 0 : i32
    return %c0_i32, %c0_i32_0 : i32, i32
  }
  func.func @transform_7(%arg0: i32) -> (i32, i32) {
    %c0_i32 = arith.constant 0 : i32
    %c0_i32_0 = arith.constant 0 : i32
    %c0_i32_1 = arith.constant 0 : i32
    return %c0_i32, %c0_i32_0 : i32, i32
  }
  func.func @transform_8(%arg0: i32) -> (i32, i32) {
    %c0_i32 = arith.constant 0 : i32
    %c0_i32_0 = arith.constant 0 : i32
    %c0_i32_1 = arith.constant 0 : i32
    return %c0_i32, %c0_i32_0 : i32, i32
  }
  func.func @transform_9(%arg0: i32) -> (i32, i32) {
    %c0_i32 = arith.constant 0 : i32
    %c0_i32_0 = arith.constant 0 : i32
    %c0_i32_1 = arith.constant 0 : i32
    return %c0_i32, %c0_i32_0 : i32, i32
  }
  func.func @transform_10(%arg0: i32) -> (i32, i32) {
    %c0_i32 = arith.constant 0 : i32
    %c0_i32_0 = arith.constant 0 : i32
    %c0_i32_1 = arith.constant 0 : i32
    return %c0_i32, %c0_i32_0 : i32, i32
  }
  func.func @transform_11(%arg0: i32) -> (i32, i32) {
    %c0_i32 = arith.constant 0 : i32
    %c0_i32_0 = arith.constant 0 : i32
    %c0_i32_1 = arith.constant 0 : i32
    return %c0_i32, %c0_i32_0 : i32, i32
  }
  func.func @transform_12(%arg0: i32) -> (i32, i32) {
    %c0_i32 = arith.constant 0 : i32
    %c0_i32_0 = arith.constant 0 : i32
    return %arg0, %c0_i32 : i32, i32
  }
}

</mosaic_0001>

<bundles_post_ra>
// kernel: decoder_layer.9
= control target key start
LH: loop header
LB: loop body
LE: loop exit
PB: predicated region body
PF: predicated region fallthrough
CT: control target
= control target key end

     0   :  { %vm27_vm0 = vcmask 261120   ;;  %vm109_vm1 = vcmask 523264   ;;  %s191_s1 = inlined_call_operand.vmem [shape: f32[32,64], index: 1, kind: input, shape index: {}]   ;;  %s192_s0 = inlined_call_operand.vmem [shape: f32[16,32], index: 0, kind: input, shape index: {}]   ;;  %s193_s2 = inlined_call_operand.vmem [shape: f32[1,64], index: 2, kind: input, shape index: {}]   ;;  %s194_s3 = inlined_call_operand.vmem [shape: f32[16,64], index: 3, kind: output, shape index: {}]  }
   0x1   :  { %v16_v0 = vld [vmem:[%s191_s1] sm:$0xff]  ;;  %v17_v1 = vld [vmem:[%s191_s1 + $0x8] sm:$0xff]  ;;  %v18_v2 = vld [vmem:[%s191_s1 + $0x10] sm:$0xff] }
   0x2   :  { %v136_v3 = vpack.c.bf16 %v17_v1, %v16_v0  ;;  %v19_v4 = vld [vmem:[%s191_s1 + $0x18] sm:$0xff]  ;;  %v14_v5 = vld [vmem:[%s192_s0] sm:$0xff]  ;;  %v15_v7 = vld [vmem:[%s192_s0 + $0x8] sm:$0xff] }
   0x3   :  { %v140_v6 = vpack.c.bf16 %v19_v4, %v18_v2  ;;  %133 = vmatprep.mubr.msk.f32.mxu0 %vm27_vm0, %v14_v5  ;;  %v116_v8 = vld [vmem:[%s193_s2] ss:$0 sm:$0xff] }
   0x4   :  { %137 = vmatprep.subr.bf16.mxu0 %v136_v3 }
   0x5   :  { %139 = vmatpush3.bf16.msra.mxu0 %v136_v3 }
   0x6   :  { %141 = vmatprep.subr.bf16.mxu0 %v140_v6 }
   0x9   :  { %143 = vmatpush3.bf16.msra.mxu0 %v140_v6 }
   0xc   :  { %134 = vmatmul.mubr.msk.f32.vlgmr.msra.gmra.mrb[0].mxu0 %vm27_vm0, %v15_v7 }
  0xdf   :  { %v135_v9 = vpop.f32.mrb[0].mxu0 }
  0xe0   :  { %v106_v10 = vadd.f32 %v135_v9, %v116_v8  ;;  %v100_v11 = vpop.f32.mrb[1].mxu0 }
  0xe1   :  { %v101_v12 = vadd.f32 %v116_v8, %v100_v11 }
  0xe2   :  { %111 = vst.msk [vmem:[%s194_s3 + $0x8] sm:$0xff] %vm109_vm1, %v106_v10 }
  0xe3   :  { %110 = vst.msk [vmem:[%s194_s3] sm:$0xff] %vm109_vm1, %v101_v12 }

// kernel: decoder_layer.8
= control target key start
LH: loop header
LB: loop body
LE: loop exit
PB: predicated region body
PF: predicated region fallthrough
CT: control target
= control target key end

     0   :  { %vm39_vm0 = vcmask 261120   ;;  %s465_s2 = inlined_call_operand.vmem [shape: f32[32,32], index: 2, kind: input, shape index: {}]   ;;  %s466_s0 = inlined_call_operand.vmem [shape: f32[16,32], index: 0, kind: input, shape index: {}]   ;;  %s467_s1 = inlined_call_operand.vmem [shape: f32[16,32], index: 1, kind: input, shape index: {}]   ;;  %s468_s3 = inlined_call_operand.vmem [shape: f32[1,32], index: 3, kind: input, shape index: {}]   ;;  %s469_s6 = inlined_call_operand.vmem [shape: f32[32,32], index: 6, kind: input, shape index: {}]   ;;  %s470_s4 = inlined_call_operand.vmem [shape: f32[1,32], index: 4, kind: input, shape index: {}]   ;;  %s471_s5 = inlined_call_operand.vmem [shape: f32[1,32], index: 5, kind: input, shape index: {}]   ;;  %s472_s8 = inlined_call_operand.vmem [shape: f32[16,32], index: 8, kind: output, shape index: {0}]   ;;  %s473_s7 = inlined_call_operand.vmem [shape: f32[1,32], index: 7, kind: input, shape index: {}]   ;;  %s474_s9 = inlined_call_operand.vmem [shape: f32[16,32], index: 9, kind: output, shape index: {1}]  }
   0x1   :  { %v35_v0 = vld [vmem:[%s465_s2] sm:$0xff]  ;;  %v36_v1 = vld [vmem:[%s465_s2 + $0x8] sm:$0xff]  ;;  %v37_v2 = vld [vmem:[%s465_s2 + $0x10] sm:$0xff] }
   0x2   :  { %v323_v3 = vpack.c.bf16 %v36_v1, %v35_v0  ;;  %v38_v4 = vld [vmem:[%s465_s2 + $0x18] sm:$0xff]  ;;  %v33_v5 = vld [vmem:[%s466_s0] sm:$0xff]  ;;  %v34_v7 = vld [vmem:[%s466_s0 + $0x8] sm:$0xff] }
   0x3   :  { %v327_v6 = vpack.c.bf16 %v38_v4, %v37_v2  ;;  %309 = vmatprep.mubr.msk.f32.mxu0 %vm39_vm0, %v33_v5  ;;  %v32_v8 = vld [vmem:[%s467_s1 + $0x8] sm:$0xff]  ;;  %v31_v9 = vld [vmem:[%s467_s1] sm:$0xff]  ;;  %v181_v31 = vld [vmem:[%s469_s6 + $0x10] sm:$0xff] }
   0x4   :  { %324 = vmatprep.subr.bf16.mxu0 %v323_v3  ;;  %v283_v12 = vld [vmem:[%s468_s3] ss:$0 sm:$0xff]  ;;  %v180_v30 = vld [vmem:[%s469_s6 + $0x8] sm:$0xff]  ;;  %v182_v33 = vld [vmem:[%s469_s6 + $0x18] sm:$0xff] }
   0x5   :  { %326 = vmatpush3.bf16.msra.mxu0 %v323_v3  ;;  %v179_v29 = vld [vmem:[%s469_s6] sm:$0xff]  ;;  %v335_v34 = vpack.c.bf16 %v182_v33, %v181_v31 }
   0x6   :  { %328 = vmatprep.subr.bf16.mxu0 %v327_v6  ;;  %v331_v32 = vpack.c.bf16 %v180_v30, %v179_v29  ;;  %v284_v42 = vld [vmem:[%s470_s4] ss:$0 sm:$0xff] }
   0x7   :  { %v285_v44 = vld [vmem:[%s471_s5] ss:$0 sm:$0xff] }
   0x8   :  { %332 = vmatprep.subr.bf16.mxu1 %v331_v32  ;;  %v286_v51 = vld [vmem:[%s473_s7] ss:$0 sm:$0xff] }
   0x9   :  { %330 = vmatpush3.bf16.msra.mxu0 %v327_v6  ;;  %334 = vmatpush3.bf16.msra.mxu1 %v331_v32 }
   0xa   :  { %336 = vmatprep.subr.bf16.mxu1 %v335_v34 }
   0xc   :  { %310 = vmatmul.mubr.msk.f32.vlgmr.msra.gmra.mrb[0].mxu0 %vm39_vm0, %v34_v7 }
   0xd   :  { %338 = vmatpush3.bf16.msra.mxu1 %v335_v34 }
  0xdf   :  { %v311_v10 = vpop.f32.mrb[0].mxu0 }
  0xe0   :  { %v112_v11 = vpop.f32.mrb[1].mxu0  ;;  %v122_v13 = vadd.f32 %v311_v10, %v32_v8 }
  0xe1   :  { %v121_v14 = vadd.f32 %v112_v11, %v31_v9 }
  0xe2   :  { %v131_v17 = vadd.f32 %v283_v12, %v122_v13 }
  0xe3   :  { %v130_v15 = vadd.f32 %v283_v12, %v121_v14 }
  0xe4   :  { %v137_v18 = vsel %vm39_vm0, %v131_v17, 0.0 }
  0xe5   :  { %v134_v16 = vsel %vm39_vm0, %v130_v15, 0.0 }
  0xe6   :  { %135 = vadd.xlane.f32.xlu0 %v134_v16 }
  0xea   :  { %138 = vadd.xlane.f32.xlu0 %v137_v18 }
 0x173   :  { %v136_v19 = vpop.xlane.xlu0 %135 }
 0x174   :  { %v141_v20 = vmul.f32 0.03125, %v136_v19 }
 0x176   :  { %v143_v21 = vsub.f32 %v130_v15, %v141_v20 }
 0x177   :  { %v139_v22 = vpop.xlane.xlu0 %138 }
 0x178   :  { %v142_v23 = vmul.f32 0.03125, %v139_v22  ;;  %v145_v24 = vmul.f32 %v143_v21, %v143_v21 }
 0x17a   :  { %v144_v25 = vsub.f32 %v131_v17, %v142_v23  ;;  %v147_v26 = vsel %vm39_vm0, %v145_v24, 0.0 }
 0x17b   :  { %148 = vadd.xlane.f32.xlu1 %v147_v26 }
 0x17c   :  { %v146_v27 = vmul.f32 %v144_v25, %v144_v25 }
 0x17e   :  { %v150_v28 = vsel %vm39_vm0, %v146_v27, 0.0 }
 0x17f   :  { %151 = vadd.xlane.f32.xlu1 %v150_v28 }
 0x208   :  { %v149_v35 = vpop.xlane.xlu1 %148 }
 0x209   :  { %v153_v36 = vmul.f32 0.03125, %v149_v35 }
 0x20b   :  { %v155_v37 = vadd.f32 1e-05, %v153_v36 }
 0x20c   :  { %v152_v38 = vpop.xlane.xlu1 %151 }
 0x20d   :  { %339 = vrsqrt.f32 %v155_v37  ;;  %v154_v39 = vmul.f32 0.03125, %v152_v38 }
 0x20f   :  { %v156_v40 = vadd.f32 1e-05, %v154_v39 }
 0x211   :  { %341 = vrsqrt.f32 %v156_v40 }
 0x217   :  { %v340_v41 = vpop.eup %339 }
 0x218   :  { %v159_v43 = vmul.f32 %v340_v41, %v143_v21 }
 0x21a   :  { %v167_v45 = vmul.f32 %v284_v42, %v159_v43 }
 0x21b   :  { %v342_v46 = vpop.eup %341 }
 0x21c   :  { %v160_v47 = vmul.f32 %v342_v46, %v144_v25  ;;  %v175_v48 = vadd.f32 %v285_v44, %v167_v45 }
 0x21e   :  { %v168_v49 = vmul.f32 %v284_v42, %v160_v47  ;;  %177 = vst.msk [vmem:[%s472_s8] sm:$0xff] %vm39_vm0, %v175_v48  ;;  %320 = vmatprep.mubr.msk.f32.mxu1 %vm39_vm0, %v175_v48 }
 0x220   :  { %v176_v50 = vadd.f32 %v285_v44, %v168_v49 }
 0x222   :  { %178 = vst.msk [vmem:[%s472_s8 + $0x8] sm:$0xff] %vm39_vm0, %v176_v50  ;;  %321 = vmatmul.mubr.msk.f32.vlgmr.msra.gmra.mrb[0].mxu1 %vm39_vm0, %v176_v50 }
 0x2f5   :  { %v322_v52 = vpop.f32.mrb[0].mxu1 }
 0x2f6   :  { %v268_v53 = vadd.f32 %v322_v52, %v286_v51  ;;  %v262_v54 = vpop.f32.mrb[1].mxu1 }
 0x2f7   :  { %v263_v55 = vadd.f32 %v286_v51, %v262_v54 }
 0x2f8   :  { %272 = vst.msk [vmem:[%s474_s9 + $0x8] sm:$0xff] %vm39_vm0, %v268_v53 }
 0x2f9   :  { %271 = vst.msk [vmem:[%s474_s9] sm:$0xff] %vm39_vm0, %v263_v55 }

// kernel: decoder_layer.6
= control target key start
LH: loop header
LB: loop body
LE: loop exit
PB: predicated region body
PF: predicated region fallthrough
CT: control target
= control target key end

     0   :  { %vm27_vm0 = vcmask 261120   ;;  %vm109_vm1 = vcmask 785408   ;;  %s191_s1 = inlined_call_operand.vmem [shape: f32[32,96], index: 1, kind: input, shape index: {}]   ;;  %s192_s0 = inlined_call_operand.vmem [shape: f32[16,32], index: 0, kind: input, shape index: {}]   ;;  %s193_s2 = inlined_call_operand.vmem [shape: f32[1,96], index: 2, kind: input, shape index: {}]   ;;  %s194_s3 = inlined_call_operand.vmem [shape: f32[16,96], index: 3, kind: output, shape index: {}]  }
   0x1   :  { %v16_v0 = vld [vmem:[%s191_s1] sm:$0xff]  ;;  %v17_v1 = vld [vmem:[%s191_s1 + $0x8] sm:$0xff]  ;;  %v18_v2 = vld [vmem:[%s191_s1 + $0x10] sm:$0xff] }
   0x2   :  { %v136_v3 = vpack.c.bf16 %v17_v1, %v16_v0  ;;  %v19_v4 = vld [vmem:[%s191_s1 + $0x18] sm:$0xff]  ;;  %v14_v5 = vld [vmem:[%s192_s0] sm:$0xff]  ;;  %v15_v7 = vld [vmem:[%s192_s0 + $0x8] sm:$0xff] }
   0x3   :  { %v140_v6 = vpack.c.bf16 %v19_v4, %v18_v2  ;;  %133 = vmatprep.mubr.msk.f32.mxu0 %vm27_vm0, %v14_v5  ;;  %v116_v8 = vld [vmem:[%s193_s2] ss:$0 sm:$0xff] }
   0x4   :  { %137 = vmatprep.subr.bf16.mxu0 %v136_v3 }
   0x5   :  { %139 = vmatpush3.bf16.msra.mxu0 %v136_v3 }
   0x6   :  { %141 = vmatprep.subr.bf16.mxu0 %v140_v6 }
   0x9   :  { %143 = vmatpush3.bf16.msra.mxu0 %v140_v6 }
   0xc   :  { %134 = vmatmul.mubr.msk.f32.vlgmr.msra.gmra.mrb[0].mxu0 %vm27_vm0, %v15_v7 }
  0xdf   :  { %v135_v9 = vpop.f32.mrb[0].mxu0 }
  0xe0   :  { %v106_v10 = vadd.f32 %v135_v9, %v116_v8  ;;  %v100_v11 = vpop.f32.mrb[1].mxu0 }
  0xe1   :  { %v101_v12 = vadd.f32 %v116_v8, %v100_v11 }
  0xe2   :  { %111 = vst.msk [vmem:[%s194_s3 + $0x8] sm:$0xff] %vm109_vm1, %v106_v10 }
  0xe3   :  { %110 = vst.msk [vmem:[%s194_s3] sm:$0xff] %vm109_vm1, %v101_v12 }

// kernel: decoder_layer.7
= control target key start
LH: loop header
LB: loop body
LE: loop exit
PB: predicated region body
PF: predicated region fallthrough
CT: control target
= control target key end

     0   :  { %10 = vsyncpa [#allocation3], 0  ;;  %s1465_s0 = inlined_call_operand.vmem [shape: f32[2,4,8,8], index: 0, kind: input, shape index: {}]   ;;  %s1466_s1 = inlined_call_operand.vmem [shape: f32[2,4,8,8], index: 1, kind: input, shape index: {}]   ;;  %s1467_s2 = inlined_call_operand.vmem [shape: f32[2,4,8,8], index: 2, kind: input, shape index: {}]   ;;  %s1468_s3 = inlined_call_operand.vmem [shape: f32[2,4,8,8], index: 3, kind: output, shape index: {0}]   ;;  %s1469_s4 = inlined_call_operand.hbm [shape: f32[2,4,8,8], index: 4, kind: output, shape index: {1}]  }
   0x1   :  { %12 = vsyncpa [#allocation3 + $0x1], 0  ;;  %s1291_s15 = smov 0   ;;  %s1293_s16 = smov 0  }
   0x2   :  { %s1295_s17 = smov 0   ;;  %s1297_s18 = smov 0  }
   0x3 LB: > { %s1312_s19 = sadd.s32 4294967295, %s1259_s18   ;;  %s1047_s20 = sadd.s32 4294967294, %s1259_s18   ;;  %s1259_s18 = sphi %s1297_s18, %s1475_s18   ;;  %s1255_s17 = sphi %s1295_s17, %s1474_s17   ;;  %s1251_s16 = sphi %s1293_s16, %s1473_s16   ;;  %s1247_s15 = sphi %s1291_s15, %s1472_s15  }
   0x4   : > { %s1316_s21 = sadd.s32 1, %s1259_s18   ;;  %s129_s22 = sadd.s32 1, %s1255_s17 }
   0x5   : > { %s126_s23 = ssub.s32 %s1259_s18, %s1316_s21  ;;  %p139_p0 = scmp.ne.s32.totalorder %s1255_s17, %s1251_s16 }
   0x6   : > { %p127_p1 = scmp.eq.s32.totalorder %s126_s23, 0  ;;  %p140_p2 = scmp.eq.s32.totalorder %s1312_s19, 1 }
   0x7   : > { %p145_p3 = scmp.ne.s32.totalorder %s1251_s16, %s1247_s15  ;;  %p146_p4 = scmp.eq.s32.totalorder %s1047_s20, 1 }
   0x8   : > { %s1327_s24 = scalar_select %p127_p1, %s1255_s17, %s129_s22  }
   0x9   : > { %p1329_p5 = por %p140_p2, %p139_p0  ;;  %p1333_p6 = por %p146_p4, %p145_p3 }
   0xa   : > { %p1050_p7 = scmp.ge.s32.totalorder %s1259_s18, 1  ;;  %p188_p8 = scmp.lt.s32.totalorder %s1259_s18, 3 }
   0xc   : > { %p189_p9 = pnand %p1050_p7, %p188_p8 }
   0xd   : > { %p229_p10 = scmp.lt.s32.totalorder (!%p189_p9), %s1312_s19, 1  ;;  %v1261_v0 = vmov (!%p189_p9), 0.0   ;;  %vm1262_vm0 = vmmov (!%p189_p9), 0   ;;  %vm265_vm1 = vcmask (!%p189_p9), 64512   ;;  %s226_s12 = sand.u32 (!%p189_p9), 1, %s1251_s16  }
   0xe   : > { %192 = sbr.rel (%p189_p9) target bundleno = 776 (0x308), region = 32  ;;  %1098 = vmatprep.subr.mxu0 (!%p189_p9), %v1261_v0  ;;  %1100 = vmatprep.mubr.msk.f32.mxu0 (!%p189_p9), %vm1262_vm0, %v1261_v0  ;;  %s1051_s13 = sshll.u32 (!%p189_p9), %s226_s12, 5 }
   0xf   : > { %1103 = vmatprep.subr.mxu1 (!%p189_p9), %v1261_v0  ;;  %1105 = vmatprep.mubr.msk.f32.mxu1 (!%p189_p9), %vm1262_vm0, %v1261_v0  ;;  %s228_s14 = scalar_lea.vmem (!%p189_p9), [#allocation2], %s1051_s13  ;;  %s1081_s20 = sshll.u32 (!%p189_p9), %s1312_s19, 9 }
  0x10   : > { %s936_s22 = sshll.u32 (!%p189_p9), %s228_s14, 4  ;;  %s1410_s29 = scalar_lea.hbm (!%p189_p9), %s1469_s4, %s1081_s20  ;;  %s1412_s22 = int_to_ptr.vmem [resolvable:$true] %s936_s22 }
  0x11   : > { %s1416_s30 = scalar_lea.sflag (!%p189_p9), [#allocation3], %s226_s12 }
  0x15   : > { %s230_s27 = scalar_select %p229_p10, %s1312_s19, 1 }
  0x16   : > { %s1263_s19 = smov [#allocation2]  }
  0x17   : > { %s1347_s28 = sshll.u32 %s230_s27, 5  ;;  %s1201_s6 = sshll.u32 %s1263_s19, 4  ;;  %s1202_s6 = int_to_ptr.vmem [resolvable:$false] %s1201_s6 }
  0x18   : > { %s238_s5 = scalar_lea.vmem %s1466_s1, %s1347_s28  ;;  %s233_s8 = scalar_lea.vmem %s1465_s0, %s1347_s28 }
  0x19   : > { %v257_v1 = vld [vmem:[%s238_s5] sm:$0xff]  ;;  %v258_v3 = vld [vmem:[%s238_s5 + $0x8] sm:$0xff]  ;;  %v251_v6 = vld [vmem:[%s233_s8 + $0x10] sm:$0xff]  ;;  %s243_s11 = scalar_lea.vmem %s1467_s2, %s1347_s28  ;;  %s1203_s7 = scalar_lea.vmem %s1202_s6, 1024 }
  0x1a   : > { %v249_v2 = vld [vmem:[%s233_s8] sm:$0xff]  ;;  %1099 = vmatpush3.xpose.msk.msra.mxu0 %vm265_vm1, %v257_v1  ;;  %1104 = vmatpush3.xpose.msk.msra.mxu1 %vm265_vm1, %v258_v3  ;;  %v250_v5 = vld [vmem:[%s233_s8 + $0x8] sm:$0xff]  ;;  %v259_v7 = vld [vmem:[%s238_s5 + $0x10] sm:$0xff]  ;;  %v255_v11 = vmul.f32 0.35355338, %v251_v6  ;;  %p1204_p0 = scmp.lt.s32.totalorder %s1412_s22, %s1202_s6 }
  0x1b   : > { %v253_v4 = vmul.f32 0.35355338, %v249_v2  ;;  %1108 = vmatprep.subr.mxu0 %v1261_v0  ;;  %v254_v8 = vmul.f32 0.35355338, %v250_v5  ;;  %1113 = vmatprep.subr.mxu1 %v1261_v0  ;;  %v252_v9 = vld [vmem:[%s233_s8 + $0x18] sm:$0xff]  ;;  %v261_v45 = vld [vmem:[%s243_s11] sm:$0xff] }
  0x1c   : > { %v260_v10 = vld [vmem:[%s238_s5 + $0x18] sm:$0xff]  ;;  %v256_v12 = vmul.f32 0.35355338, %v252_v9  ;;  %v262_v46 = vld [vmem:[%s243_s11 + $0x8] sm:$0xff]  ;;  %v263_v53 = vld [vmem:[%s243_s11 + $0x10] sm:$0xff]  ;;  %s1197_s5 = scalar_lea.vmem %s1412_s22, 512 }
  0x1d   : > { %1101 = vmatmul.mubr.msk.f32.vlgmr.msra.gmra.mrb[0].mxu0 %vm265_vm1, %v253_v4  ;;  %1106 = vmatmul.mubr.msk.f32.vlgmr.msra.gmra.mrb[0].mxu1 %vm265_vm1, %v254_v8  ;;  %v264_v57 = vld [vmem:[%s243_s11 + $0x18] sm:$0xff]  ;;  %p1198_p11 = scmp.ne.s32.totalorder %s1412_s22, %s1197_s5  ;;  %p1205_p1 = scmp.lt.s32.totalorder %s1203_s7, %s1197_s5 }
  0x1e   : > { %1109 = vmatpush3.xpose.msk.msra.mxu0 %vm265_vm1, %v259_v7  ;;  %1110 = vmatprep.mubr.msk.f32.mxu0 %vm1262_vm0, %v1261_v0 }
  0x1f   : > { %1114 = vmatpush3.xpose.msk.msra.mxu1 %vm265_vm1, %v260_v10  ;;  %1115 = vmatprep.mubr.msk.f32.mxu1 %vm1262_vm0, %v1261_v0  ;;  %p1199_p12 = pnand %p1198_p11, %p1329_p5  ;;  %p1206_p2 = por %p1205_p1, %p1204_p0 }
  0x20   : > { %1118 = vmatprep.subr.mxu0 %v1261_v0  ;;  %1123 = vmatprep.subr.mxu1 %v1261_v0 }
  0x21   : > { %1111 = vmatmul.mubr.msk.f32.vlgmr.msra.gmra.mrb[2].mxu0 %vm265_vm1, %v255_v11  ;;  %p1200_p13 = pneg %p1199_p12 }
  0x22   : > { %1116 = vmatmul.mubr.msk.f32.vlgmr.msra.gmra.mrb[2].mxu1 %vm265_vm1, %v256_v12  ;;  %1120 = vmatprep.mubr.msk.f32.mxu0 %vm1262_vm0, %v1261_v0 }
  0x23   : > { %1125 = vmatprep.mubr.msk.f32.mxu1 %vm1262_vm0, %v1261_v0  ;;  %1119 = vmatpush3.msra.mxu0 %v261_v45  ;;  %p1207_p3 = pnand %p1206_p2, %p1200_p13 }
  0x24   : > { %1128 = vmatprep.subr.mxu0 %v1261_v0  ;;  %1124 = vmatpush3.msra.mxu1 %v262_v46 }
  0x25   : > { %1133 = vmatprep.subr.mxu1 %v1261_v0 }
  0xf0   : > { %v338_v13 = vpop.f32.mrb[0].mxu0  ;;  %v414_v14 = vpop.f32.mrb[0].mxu1 }
  0xf1   : > { %v1102_v15 = vpop.f32.mrb[1].mxu0  ;;  %v570_v16 = vsel %vm265_vm1, %v338_v13, -inf  ;;  %v1107_v17 = vpop.f32.mrb[1].mxu1  ;;  %v573_v18 = vsel %vm265_vm1, %v414_v14, -inf }
  0xf2   : > { %571 = vmax.xlane.f32.xlu0 %v570_v16 }
  0xf4   : > { %v490_v19 = vpop.f32.mrb[2].mxu0 }
  0xf5   : > { %v1112_v20 = vpop.f32.mrb[3].mxu0  ;;  %v576_v21 = vsel %vm265_vm1, %v490_v19, -inf  ;;  %v566_v22 = vpop.f32.mrb[2].mxu1 }
  0xf6   : > { %574 = vmax.xlane.f32.xlu0 %v573_v18  ;;  %577 = vmax.xlane.f32.xlu1 %v576_v21  ;;  %v1117_v23 = vpop.f32.mrb[3].mxu1  ;;  %v579_v24 = vsel %vm265_vm1, %v566_v22, -inf }
  0xfa   : > { %580 = vmax.xlane.f32.xlu1 %v579_v24 }
 0x17f   : > { %v572_v25 = vpop.xlane.xlu0 %571 }
 0x180   : > { %v582_v26 = vsub.f32 %v338_v13, %v572_v25 }
 0x182   : > { %v586_v27 = vmul.f32 1.442695, %v582_v26 }
 0x183   : > { %v575_v28 = vpop.xlane.xlu0 %574  ;;  %v578_v29 = vpop.xlane.xlu1 %577 }
 0x184   : > { %1181 = vpow2.f32 %v586_v27  ;;  %v583_v30 = vsub.f32 %v414_v14, %v575_v28  ;;  %v584_v31 = vsub.f32 %v490_v19, %v578_v29 }
 0x186   : > { %v588_v32 = vmul.f32 1.442695, %v583_v30  ;;  %v590_v33 = vmul.f32 1.442695, %v584_v31 }
 0x187   : > { %v581_v34 = vpop.xlane.xlu1 %580 }
 0x188   : > { %1183 = vpow2.f32 %v588_v32  ;;  %v585_v35 = vsub.f32 %v566_v22, %v581_v34 }
 0x189   : > { %1185 = vpow2.f32 %v590_v33 }
 0x18a   : > { %v592_v36 = vmul.f32 1.442695, %v585_v35 }
 0x18c   : > { %1187 = vpow2.f32 %v592_v36 }
 0x18e   : > { %v1182_v37 = vpop.eup %1181 }
 0x18f   : > { %v594_v38 = vsel %vm265_vm1, %v1182_v37, 0.0 }
 0x190   : > { %595 = vadd.xlane.f32.xlu0 %v594_v38 }
 0x192   : > { %v1184_v39 = vpop.eup %1183 }
 0x193   : > { %v1186_v40 = vpop.eup %1185  ;;  %v597_v41 = vsel %vm265_vm1, %v1184_v39, 0.0 }
 0x194   : > { %598 = vadd.xlane.f32.xlu1 %v597_v41  ;;  %v600_v42 = vsel %vm265_vm1, %v1186_v40, 0.0 }
 0x195   : > { %601 = vadd.xlane.f32.xlu0 %v600_v42 }
 0x196   : > { %v1188_v43 = vpop.eup %1187 }
 0x197   : > { %v603_v44 = vsel %vm265_vm1, %v1188_v43, 0.0 }
 0x198   : > { %604 = vadd.xlane.f32.xlu1 %v603_v44 }
 0x21d   : > { %v596_v47 = vpop.xlane.xlu0 %595 }
 0x21e   : > { %1189 = vrcp.f32 %v596_v47 }
 0x221   : > { %v599_v48 = vpop.xlane.xlu1 %598 }
 0x222   : > { %v602_v49 = vpop.xlane.xlu0 %601  ;;  %1191 = vrcp.f32 %v599_v48 }
 0x223   : > { %1193 = vrcp.f32 %v602_v49 }
 0x225   : > { %v605_v50 = vpop.xlane.xlu1 %604 }
 0x226   : > { %1195 = vrcp.f32 %v605_v50 }
 0x228   : > { %v1190_v51 = vpop.eup %1189 }
 0x229   : > { %v610_v52 = vmul.f32 %v1190_v51, %v1182_v37 }
 0x22b   : > { %614 = vst.msk [vmem:[%s228_s14] sm:$0xff] %vm265_vm1, %v610_v52  ;;  %1121 = vmatmul.mubr.msk.f32.vlgmr.msra.gmra.mrb[4].mxu0 %vm265_vm1, %v610_v52 }
 0x22c   : > { %v1192_v54 = vpop.eup %1191  ;;  %1129 = vmatpush3.msra.mxu0 %v263_v53  ;;  %1130 = vmatprep.mubr.msk.f32.mxu0 %vm1262_vm0, %v1261_v0 }
 0x22d   : > { %v1194_v55 = vpop.eup %1193  ;;  %v611_v56 = vmul.f32 %v1192_v54, %v1184_v39 }
 0x22e   : > { %v612_v58 = vmul.f32 %v1194_v55, %v1186_v40 }
 0x22f   : > { %615 = vst.msk [vmem:[%s228_s14 + $0x8] sm:$0xff] %vm265_vm1, %v611_v56  ;;  %1126 = vmatmul.mubr.msk.f32.vlgmr.msra.gmra.mrb[4].mxu1 %vm265_vm1, %v611_v56 }
 0x230   : > { %v1196_v59 = vpop.eup %1195  ;;  %616 = vst.msk [vmem:[%s228_s14 + $0x10] sm:$0xff] %vm265_vm1, %v612_v58  ;;  %1131 = vmatmul.mubr.msk.f32.vlgmr.msra.gmra.mrb[6].mxu0 %vm265_vm1, %v612_v58  ;;  %1134 = vmatpush3.msra.mxu1 %v264_v57 }
 0x231   : > { %v613_v60 = vmul.f32 %v1196_v59, %v1188_v43  ;;  %1135 = vmatprep.mubr.msk.f32.mxu1 %vm1262_vm0, %v1261_v0 }
 0x233   : > { %617 = vst.msk [vmem:[%s228_s14 + $0x18] sm:$0xff] %vm265_vm1, %v613_v60  ;;  %1136 = vmatmul.mubr.msk.f32.vlgmr.msra.gmra.mrb[6].mxu1 %vm265_vm1, %v613_v60 }
 0x234   : > { %1210 = shalt.err (!%p1207_p3)
}
 0x235   : > { %s1211_s8 = scalar_lea.hbm %s1410_s29, 512  ;;  %s1215_s11 = scalar_lea.hbm %s1469_s4, 1024 }
 0x236   : > { %p1212_p4 = scmp.ne.s32.totalorder %s1410_s29, %s1211_s8  ;;  %p1216_p9 = scmp.lt.u32.totalorder %s1410_s29, %s1469_s4 }
 0x237   : > { %p1217_p10 = scmp.lt.u32.totalorder %s1215_s11, %s1211_s8  ;;  %p1219_p12 = scmp.lt.u32.totalorder %s1211_s8, %s1410_s29 }
 0x238   : > { %p1213_p7 = pnand %p1212_p4, %p1329_p5 }
 0x239   : > { %p1218_p11 = por %p1217_p10, %p1216_p9 }
 0x23a   : > { %p1214_p8 = pneg %p1213_p7 }
 0x23b   : > { %p1220_p13 = por %p1219_p12, %p1218_p11 }
 0x23d   : > { %p1221_p0 = pnand %p1220_p13, %p1214_p8 }
 0x23f   : > { %1224 = shalt.err (!%p1221_p0)
}
 0x240   : > { %s1264_s14 = smov 128   ;;  %s1265_s20 = smov 8  }
 0x241   : > { %1138 = dma.vmem_to_hbm [thread:$0]  (%p1329_p5), %s1412_s22, 512, %s1410_s29, %s1416_s30, %s1264_s14, %s1264_s14, %s1265_s20  }
 0x242   : > { %s248_s5 = scalar_lea.vmem %s1468_s3, %s1347_s28 }
 0x2fe   : > { %v687_v61 = vpop.f32.mrb[4].mxu0 }
 0x2ff   : > { %910 = vst.msk [vmem:[%s248_s5] sm:$0xff] %vm265_vm1, %v687_v61  ;;  %v1122_v62 = vpop.f32.mrb[5].mxu0 }
 0x302   : > { %v760_v63 = vpop.f32.mrb[4].mxu1 }
 0x303   : > { %911 = vst.msk [vmem:[%s248_s5 + $0x8] sm:$0xff] %vm265_vm1, %v760_v63  ;;  %v833_v0 = vpop.f32.mrb[6].mxu0  ;;  %v1127_v1 = vpop.f32.mrb[5].mxu1 }
 0x304   : > { %912 = vst.msk [vmem:[%s248_s5 + $0x10] sm:$0xff] %vm265_vm1, %v833_v0  ;;  %v1132_v2 = vpop.f32.mrb[7].mxu0 }
 0x306   : > { %v906_v3 = vpop.f32.mrb[6].mxu1 }
 0x307   : > { %913 = vst.msk [vmem:[%s248_s5 + $0x18] sm:$0xff] %vm265_vm1, %v906_v3  ;;  %v1137_v4 = vpop.f32.mrb[7].mxu1 }
 0x308 PF: > { %p1144_p5 = scmp.ge.s32.totalorder %s1259_s18, 2  ;;  %s959_s25 = sand.u32 1, %s1247_s15  }
 0x309   : > { %s960_s28 = scalar_lea.sflag [#allocation3], %s959_s25 }
 0x30a   : > { %p1141_p1 = pnand %p1144_p5, %p1333_p6 }
 0x30c   : > { %1242 = dma.done.wait (!%p1141_p1), %s960_s28, 512  }
 0x30d   : > { %1244 = vsyncadd (!%p1141_p1), %s960_s28, 4294966784  ;;  %p15_p2 = scmp.ge.s32.totalorder %s1316_s21, 4   ;;  %s1472_s15 = smov %s1251_s16 }
 0x30e   : > { %s1473_s16 = smov %s1255_s17  ;;  %s1474_s17 = smov %s1327_s24 }
 0x30f   : > { %s1475_s18 = smov %s1316_s21  ;;  %17 = sbr.rel (!%p15_p2) target bundleno = 3 (0x3), region = 85 }
 0x316   :  { %965 = vsyncpa [#allocation3], 1 }
 0x317   :  { %967 = vsyncpa [#allocation3 + $0x1], 1 }

// kernel: decoder_layer.11
= control target key start
LH: loop header
LB: loop body
LE: loop exit
PB: predicated region body
PF: predicated region fallthrough
CT: control target
= control target key end

     0   :  { %vm50_vm0 = vcmask 261120   ;;  %s763_s0 = inlined_call_operand.vmem [shape: f32[16,32], index: 0, kind: input, shape index: {}]   ;;  %s764_s1 = inlined_call_operand.vmem [shape: f32[16,32], index: 1, kind: input, shape index: {}]   ;;  %s765_s2 = inlined_call_operand.vmem [shape: f32[32,32], index: 2, kind: input, shape index: {}]   ;;  %s766_s3 = inlined_call_operand.vmem [shape: f32[1,32], index: 3, kind: input, shape index: {}]   ;;  %s767_s4 = inlined_call_operand.vmem [shape: f32[1,32], index: 4, kind: input, shape index: {}]   ;;  %s768_s5 = inlined_call_operand.vmem [shape: f32[1,32], index: 5, kind: input, shape index: {}]   ;;  %s769_s6 = inlined_call_operand.vmem [shape: f32[32,64], index: 6, kind: input, shape index: {}]   ;;  %s770_s7 = inlined_call_operand.vmem [shape: f32[1,64], index: 7, kind: input, shape index: {}]   ;;  %s771_s8 = inlined_call_operand.vmem [shape: f32[64,32], index: 8, kind: input, shape index: {}]   ;;  %s772_s9 = inlined_call_operand.vmem [shape: f32[1,32], index: 9, kind: input, shape index: {}]   ;;  %s773_s10 = inlined_call_operand.vmem [shape: f32[1,32], index: 10, kind: input, shape index: {}]   ;;  %s774_s11 = inlined_call_operand.vmem [shape: f32[1,32], index: 11, kind: input, shape index: {}]   ;;  %s775_s12 = inlined_call_operand.hbm [shape: f32[16,32], index: 12, kind: output, shape index: {}]  }
   0x1   :  { %v46_v0 = vld [vmem:[%s765_s2] sm:$0xff]  ;;  %v47_v1 = vld [vmem:[%s765_s2 + $0x8] sm:$0xff]  ;;  %v48_v2 = vld [vmem:[%s765_s2 + $0x10] sm:$0xff] }
   0x2   :  { %v521_v3 = vpack.c.bf16 %v47_v1, %v46_v0  ;;  %v49_v4 = vld [vmem:[%s765_s2 + $0x18] sm:$0xff]  ;;  %v44_v5 = vld [vmem:[%s763_s0] sm:$0xff] }
   0x3   :  { %v525_v6 = vpack.c.bf16 %v49_v4, %v48_v2  ;;  %488 = vmatprep.mubr.msk.f32.mxu1 %vm50_vm0, %v44_v5 }
   0x4   :  { %17 = vsyncpa [#allocation3], 0  ;;  %522 = vmatprep.subr.bf16.mxu1 %v521_v3  ;;  %v45_v7 = vld [vmem:[%s763_s0 + $0x8] sm:$0xff]  ;;  %v42_v9 = vld [vmem:[%s764_s1] sm:$0xff]  ;;  %vm290_vm1 = vcmask 523264   ;;  %s588_s25 = smov [#allocation2]  }
   0x5   :  { %524 = vmatpush3.bf16.msra.mxu1 %v521_v3  ;;  %v43_v8 = vld [vmem:[%s764_s1 + $0x8] sm:$0xff]  ;;  %v447_v12 = vld [vmem:[%s766_s3] ss:$0 sm:$0xff]  ;;  %v190_v32 = vld [vmem:[%s769_s6 + $0x10] sm:$0xff]  ;;  %s434_s26 = sshll.u32 %s588_s25, 4  ;;  %s435_s26 = int_to_ptr.vmem [resolvable:$true] %s434_s26 }
   0x6   :  { %526 = vmatprep.subr.bf16.mxu1 %v525_v6  ;;  %v188_v29 = vld [vmem:[%s769_s6] sm:$0xff]  ;;  %v189_v30 = vld [vmem:[%s769_s6 + $0x8] sm:$0xff]  ;;  %v191_v33 = vld [vmem:[%s769_s6 + $0x18] sm:$0xff]  ;;  %s564_s27 = scalar_lea.vmem %s435_s26, 256  ;;  %p569_p1 = scmp.lt.s32.totalorder %s435_s26, %s435_s26 }
   0x7   :  { %v529_v31 = vpack.c.bf16 %v189_v30, %v188_v29  ;;  %v533_v34 = vpack.c.bf16 %v191_v33, %v190_v32  ;;  %v282_v35 = vld [vmem:[%s771_s8] sm:$0xff]  ;;  %v283_v36 = vld [vmem:[%s771_s8 + $0x8] sm:$0xff]  ;;  %v284_v37 = vld [vmem:[%s771_s8 + $0x10] sm:$0xff]  ;;  %p565_p0 = scmp.ne.s32.totalorder %s435_s26, %s564_s27  ;;  %p570_p2 = scmp.lt.s32.totalorder %s564_s27, %s564_s27 }
   0x8   :  { %v537_v38 = vpack.c.bf16 %v283_v36, %v282_v35  ;;  %v285_v39 = vld [vmem:[%s771_s8 + $0x18] sm:$0xff]  ;;  %v286_v41 = vld [vmem:[%s771_s8 + $0x20] sm:$0xff]  ;;  %v287_v42 = vld [vmem:[%s771_s8 + $0x28] sm:$0xff] }
   0x9   :  { %528 = vmatpush3.bf16.msra.mxu1 %v525_v6  ;;  %v541_v40 = vpack.c.bf16 %v285_v39, %v284_v37  ;;  %v545_v43 = vpack.c.bf16 %v287_v42, %v286_v41  ;;  %v448_v51 = vld [vmem:[%s767_s4] ss:$0 sm:$0xff]  ;;  %v288_v60 = vld [vmem:[%s771_s8 + $0x30] sm:$0xff]  ;;  %v289_v61 = vld [vmem:[%s771_s8 + $0x38] sm:$0xff]  ;;  %p571_p3 = por %p570_p2, %p569_p1 }
   0xa   :  { %530 = vmatprep.subr.bf16.mxu1 %v529_v31  ;;  %538 = vmatprep.subr.bf16.mxu0 %v537_v38  ;;  %v449_v53 = vld [vmem:[%s768_s5] ss:$0 sm:$0xff]  ;;  %v549_v62 = vpack.c.bf16 %v289_v61, %v288_v60 }
   0xb   :  { %540 = vmatpush3.bf16.msra.mxu0 %v537_v38  ;;  %v450_v63 = vld [vmem:[%s770_s7] ss:$0 sm:$0xff]  ;;  %p572_p4 = pnand %p571_p3, %p565_p0 }
   0xc   :  { %489 = vmatmul.mubr.msk.f32.vlgmr.msra.gmra.mrb[0].mxu1 %vm50_vm0, %v45_v7  ;;  %542 = vmatprep.subr.bf16.mxu0 %v541_v40  ;;  %v455_v7 = vld [vmem:[%s772_s9] ss:$0 sm:$0xff] }
   0xd   :  { %532 = vmatpush3.bf16.msra.mxu1 %v529_v31  ;;  %v456_v32 = vld [vmem:[%s773_s10] ss:$0 sm:$0xff] }
   0xe   :  { %534 = vmatprep.subr.bf16.mxu1 %v533_v34  ;;  %v457_v36 = vld [vmem:[%s774_s11] ss:$0 sm:$0xff] }
   0xf   :  { %544 = vmatpush3.bf16.msra.mxu0 %v541_v40 }
  0x10   :  { %546 = vmatprep.subr.bf16.mxu0 %v545_v43 }
  0x11   :  { %536 = vmatpush3.bf16.msra.mxu1 %v533_v34 }
  0x13   :  { %548 = vmatpush3.bf16.msra.mxu0 %v545_v43 }
  0x14   :  { %550 = vmatprep.subr.bf16.mxu0 %v549_v62 }
  0x17   :  { %552 = vmatpush3.bf16.msra.mxu0 %v549_v62 }
  0xdf   :  { %v490_v10 = vpop.f32.mrb[0].mxu1 }
  0xe0   :  { %v123_v11 = vpop.f32.mrb[1].mxu1  ;;  %v133_v13 = vadd.f32 %v490_v10, %v43_v8 }
  0xe1   :  { %v132_v14 = vadd.f32 %v123_v11, %v42_v9 }
  0xe2   :  { %v142_v17 = vadd.f32 %v447_v12, %v133_v13 }
  0xe3   :  { %v141_v15 = vadd.f32 %v447_v12, %v132_v14 }
  0xe4   :  { %v148_v18 = vsel %vm50_vm0, %v142_v17, 0.0 }
  0xe5   :  { %v145_v16 = vsel %vm50_vm0, %v141_v15, 0.0 }
  0xe6   :  { %146 = vadd.xlane.f32.xlu0 %v145_v16 }
  0xea   :  { %149 = vadd.xlane.f32.xlu0 %v148_v18 }
 0x173   :  { %v147_v19 = vpop.xlane.xlu0 %146 }
 0x174   :  { %v152_v20 = vmul.f32 0.03125, %v147_v19 }
 0x176   :  { %v154_v21 = vsub.f32 %v141_v15, %v152_v20 }
 0x177   :  { %v150_v22 = vpop.xlane.xlu0 %149 }
 0x178   :  { %v153_v23 = vmul.f32 0.03125, %v150_v22  ;;  %v156_v24 = vmul.f32 %v154_v21, %v154_v21 }
 0x17a   :  { %v155_v25 = vsub.f32 %v142_v17, %v153_v23  ;;  %v158_v26 = vsel %vm50_vm0, %v156_v24, 0.0 }
 0x17b   :  { %159 = vadd.xlane.f32.xlu1 %v158_v26 }
 0x17c   :  { %v157_v27 = vmul.f32 %v155_v25, %v155_v25 }
 0x17e   :  { %v161_v28 = vsel %vm50_vm0, %v157_v27, 0.0 }
 0x17f   :  { %162 = vadd.xlane.f32.xlu1 %v161_v28 }
 0x208   :  { %v160_v44 = vpop.xlane.xlu1 %159 }
 0x209   :  { %v164_v45 = vmul.f32 0.03125, %v160_v44 }
 0x20b   :  { %v166_v46 = vadd.f32 1e-05, %v164_v45 }
 0x20c   :  { %v163_v47 = vpop.xlane.xlu1 %162 }
 0x20d   :  { %556 = vrsqrt.f32 %v166_v46  ;;  %v165_v48 = vmul.f32 0.03125, %v163_v47 }
 0x20f   :  { %v167_v49 = vadd.f32 1e-05, %v165_v48 }
 0x211   :  { %558 = vrsqrt.f32 %v167_v49 }
 0x217   :  { %v557_v50 = vpop.eup %556 }
 0x218   :  { %v170_v52 = vmul.f32 %v557_v50, %v154_v21 }
 0x21a   :  { %v178_v54 = vmul.f32 %v448_v51, %v170_v52 }
 0x21b   :  { %v559_v55 = vpop.eup %558 }
 0x21c   :  { %v171_v56 = vmul.f32 %v559_v55, %v155_v25  ;;  %v186_v57 = vadd.f32 %v449_v53, %v178_v54 }
 0x21e   :  { %v179_v58 = vmul.f32 %v448_v51, %v171_v56  ;;  %499 = vmatprep.mubr.msk.f32.mxu1 %vm50_vm0, %v186_v57 }
 0x220   :  { %v187_v59 = vadd.f32 %v449_v53, %v179_v58 }
 0x222   :  { %500 = vmatmul.mubr.msk.f32.vlgmr.msra.gmra.mrb[2].mxu1 %vm50_vm0, %v187_v59 }
 0x2f5   :  { %v501_v0 = vpop.f32.mrb[2].mxu1 }
 0x2f6   :  { %v277_v1 = vadd.f32 %v501_v0, %v450_v63  ;;  %v271_v2 = vpop.f32.mrb[3].mxu1 }
 0x2f7   :  { %v272_v3 = vadd.f32 %v450_v63, %v271_v2 }
 0x2f8   :  { %v281_v5 = vmax.f32 %v277_v1, 0.0 }
 0x2f9   :  { %v280_v4 = vmax.f32 %v272_v3, 0.0 }
 0x2fb   :  { %518 = vmatprep.mubr.msk.f32.mxu0 %vm290_vm1, %v280_v4 }
 0x2fc   :  { %519 = vmatmul.mubr.msk.f32.vlgmr.msra.gmra.mrb[0].mxu0 %vm290_vm1, %v281_v5 }
 0x3cf   :  { %v520_v6 = vpop.f32.mrb[0].mxu0 }
 0x3d0   :  { %v373_v8 = vadd.f32 %v520_v6, %v187_v59  ;;  %v363_v9 = vpop.f32.mrb[1].mxu0 }
 0x3d1   :  { %v372_v10 = vadd.f32 %v363_v9, %v186_v57 }
 0x3d2   :  { %v382_v11 = vadd.f32 %v455_v7, %v373_v8 }
 0x3d3   :  { %v381_v12 = vadd.f32 %v455_v7, %v372_v10 }
 0x3d4   :  { %v388_v13 = vsel %vm50_vm0, %v382_v11, 0.0 }
 0x3d5   :  { %389 = vadd.xlane.f32.xlu1 %v388_v13  ;;  %v385_v14 = vsel %vm50_vm0, %v381_v12, 0.0 }
 0x3d6   :  { %386 = vadd.xlane.f32.xlu0 %v385_v14 }
 0x462   :  { %v390_v15 = vpop.xlane.xlu1 %389 }
 0x463   :  { %v392_v16 = vmul.f32 0.03125, %v390_v15  ;;  %v387_v17 = vpop.xlane.xlu0 %386 }
 0x464   :  { %v391_v18 = vmul.f32 0.03125, %v387_v17 }
 0x465   :  { %v394_v19 = vsub.f32 %v382_v11, %v392_v16 }
 0x466   :  { %v393_v20 = vsub.f32 %v381_v12, %v391_v18 }
 0x467   :  { %v396_v21 = vmul.f32 %v394_v19, %v394_v19 }
 0x468   :  { %v395_v22 = vmul.f32 %v393_v20, %v393_v20 }
 0x469   :  { %v400_v23 = vsel %vm50_vm0, %v396_v21, 0.0 }
 0x46a   :  { %401 = vadd.xlane.f32.xlu1 %v400_v23  ;;  %v397_v24 = vsel %vm50_vm0, %v395_v22, 0.0 }
 0x46b   :  { %398 = vadd.xlane.f32.xlu0 %v397_v24 }
 0x4f7   :  { %v402_v25 = vpop.xlane.xlu1 %401 }
 0x4f8   :  { %v404_v26 = vmul.f32 0.03125, %v402_v25  ;;  %v399_v27 = vpop.xlane.xlu0 %398 }
 0x4f9   :  { %v403_v28 = vmul.f32 0.03125, %v399_v27 }
 0x4fa   :  { %v406_v29 = vadd.f32 1e-05, %v404_v26 }
 0x4fb   :  { %v405_v30 = vadd.f32 1e-05, %v403_v28 }
 0x4fc   :  { %560 = vrsqrt.f32 %v406_v29 }
 0x4fd   :  { %562 = vrsqrt.f32 %v405_v30 }
 0x506   :  { %v561_v31 = vpop.eup %560 }
 0x507   :  { %v563_v33 = vpop.eup %562  ;;  %v410_v34 = vmul.f32 %v561_v31, %v394_v19 }
 0x508   :  { %v409_v35 = vmul.f32 %v563_v33, %v393_v20 }
 0x509   :  { %v418_v37 = vmul.f32 %v456_v32, %v410_v34 }
 0x50a   :  { %v417_v38 = vmul.f32 %v456_v32, %v409_v35 }
 0x50b   :  { %v426_v39 = vadd.f32 %v457_v36, %v418_v37 }
 0x50c   :  { %v425_v40 = vadd.f32 %v457_v36, %v417_v38 }
 0x50d   :  { %428 = vst.msk [vmem:[#allocation2 + $0x8] sm:$0xff] %vm50_vm0, %v426_v39 }
 0x50e   :  { %427 = vst.msk [vmem:[#allocation2] sm:$0xff] %vm50_vm0, %v425_v40 }
 0x50f   :  { %575 = shalt.err (!%p572_p4)
}
 0x510   :  { %s576_s28 = scalar_lea.hbm %s775_s12, 256 }
 0x511   :  { %p577_p5 = scmp.ne.s32.totalorder %s775_s12, %s576_s28  ;;  %p580_p6 = scmp.lt.u32.totalorder %s576_s28, %s775_s12 }
 0x513   :  { %p582_p7 = pnand %p580_p6, %p577_p5 }
 0x515   :  { %585 = shalt.err (!%p582_p7)
}
 0x516   :  { %s589_s6 = smov 128   ;;  %s590_s15 = smov 8  }
 0x517   :  { %440 = dma.vmem_to_hbm [thread:$0]  %s435_s26, 256, %s775_s12, [#allocation3], %s589_s6, %s589_s6, %s590_s15  }
 0x518   :  { %586 = dma.done.wait [#allocation3], 256  }
 0x519   :  { %587 = vsyncadd [#allocation3], 4294967040 }
 0x51a   :  { %444 = vsyncpa [#allocation3], 1 }

</bundles_post_ra>
